<compile_context>
chip_gen: v7x
topology: tpu7x:2x2x1
jax: 0.10.0
libtpu: 0.0.40
codegen_flags: <defaults>
</compile_context>

<pallas_src>
import math
from functools import partial

import jax
import jax.numpy as jnp
from jax.experimental import pallas as pl
from jax.experimental.pallas import tpu as pltpu


# ----------------------------------------------------------------------------
# Bidirectional GRU: one pallas_call, grid=(2,) over directions, in-kernel
# time loop.  Weights are stored per direction and per gate (r, z, n).
# ----------------------------------------------------------------------------
def _bigru_kernel(x_ref, wih_ref, whh_ref, bih_ref, bhh_ref,
                  out_ref, hfin_ref,
                  h_scr, gir_scr, giz_scr, gin_scr, *, T, B):
    d = pl.program_id(0)                    # 0 = forward, 1 = backward

    x = x_ref[...]                          # (T*B, D) time-major slab

    # Input projection for the whole sequence, one lane-aligned matmul per
    # gate (amortized over all T recurrence steps).
    gir_scr[...] = jnp.dot(x, wih_ref[0], preferred_element_type=jnp.float32) + bih_ref[0]
    giz_scr[...] = jnp.dot(x, wih_ref[1], preferred_element_type=jnp.float32) + bih_ref[1]
    gin_scr[...] = jnp.dot(x, wih_ref[2], preferred_element_type=jnp.float32) + bih_ref[2]

    h_scr[...] = jnp.zeros_like(h_scr)

    # Loop-invariant recurrent weights (hoisted loads).
    whh_r = whh_ref[0]
    whh_z = whh_ref[1]
    whh_n = whh_ref[2]
    bhh_r = bhh_ref[0]
    bhh_z = bhh_ref[1]
    bhh_n = bhh_ref[2]

    def step(s, carry):
        # Backward direction walks the sequence in reverse time order.
        t = jnp.where(d == 0, s, T - 1 - s)
        row = t * B
        h = h_scr[...]                                             # (B, H)

        gh_r = jnp.dot(h, whh_r, preferred_element_type=jnp.float32) + bhh_r
        gh_z = jnp.dot(h, whh_z, preferred_element_type=jnp.float32) + bhh_z
        gh_n = jnp.dot(h, whh_n, preferred_element_type=jnp.float32) + bhh_n

        # PyTorch GRU gate equations (gate order r, z, n).
        r = jax.nn.sigmoid(gir_scr[pl.ds(row, B), :] + gh_r)
        z = jax.nn.sigmoid(giz_scr[pl.ds(row, B), :] + gh_z)
        n = jnp.tanh(gin_scr[pl.ds(row, B), :] + r * gh_n)
        h_new = (1.0 - z) * n + z * h

        h_scr[...] = h_new
        out_ref[pl.ds(row, B), :] = h_new
        return carry

    jax.lax.fori_loop(0, T, step, 0, unroll=True)

    # Final hidden state written once (not per step).
    hfin_ref[...] = h_scr[...]


def bigru(x_btd, p):
    """Bidirectional GRU (num_layers=1, batch_first).
    x_btd: [B, T, D].  Returns (outputs [B, T, 2H], hidden [2, B, H])."""
    B, T, D = x_btd.shape
    H = p["whh"].shape[-1]

    # Time-major flat slab: row index = t*B + b   (plain-JAX reshape, outside kernel)
    x2d = jnp.transpose(x_btd, (1, 0, 2)).reshape(T * B, D)

    out2, hfin = pl.pallas_call(
        partial(_bigru_kernel, T=T, B=B),
        out_shape=(jax.ShapeDtypeStruct((2, T * B, H), jnp.float32),
                   jax.ShapeDtypeStruct((2, B, H), jnp.float32)),
        grid_spec=pltpu.PrefetchScalarGridSpec(
            num_scalar_prefetch=0,
            grid=(2,),                                   # directions
            in_specs=[
                pl.BlockSpec((T * B, D), lambda d: (0, 0)),          # shared x slab
                pl.BlockSpec((None, 3, D, H), lambda d: (d, 0, 0, 0)),
                pl.BlockSpec((None, 3, H, H), lambda d: (d, 0, 0, 0)),
                pl.BlockSpec((None, 3, 1, H), lambda d: (d, 0, 0, 0)),
                pl.BlockSpec((None, 3, 1, H), lambda d: (d, 0, 0, 0)),
            ],
            out_specs=(
                pl.BlockSpec((None, T * B, H), lambda d: (d, 0, 0)),
                pl.BlockSpec((None, B, H), lambda d: (d, 0, 0)),
            ),
            scratch_shapes=[
                pltpu.VMEM((B, H), jnp.float32),          # hidden state carry
                pltpu.VMEM((T * B, H), jnp.float32),      # gi_r
                pltpu.VMEM((T * B, H), jnp.float32),      # gi_z
                pltpu.VMEM((T * B, H), jnp.float32),      # gi_n
            ],
        ),
        compiler_params=pltpu.CompilerParams(
            dimension_semantics=("parallel",)),            # fwd/bwd independent (v7x 2 TCs)
    )(x2d, p["wih"], p["whh"], p["bih"], p["bhh"])

    out_f = out2[0].reshape(T, B, H)
    out_b = out2[1].reshape(T, B, H)
    out = jnp.transpose(jnp.concatenate([out_f, out_b], axis=-1), (1, 0, 2))  # [B,T,2H]
    return out, hfin                                                          # hfin: [2,B,H]


# ----------------------------------------------------------------------------
# BiDAF attention flow — single kernel invocation, all N batch elements
# processed together; context passed once (shared) instead of broadcast.
# ----------------------------------------------------------------------------
def _bidaf_kernel(ctx_ref, q_ref, cmask_ref, qmask_ref,
                  g_ref, c2q_ref, q2c_ref):
    ctx = ctx_ref[...]                  # (T, 2H)   shared context
    q = q_ref[...]                      # (N, J, 2H)
    cm = cmask_ref[...]                 # (1, T)
    qm = qmask_ref[...]                 # (N, J)

    N, J, D2 = q.shape
    T = ctx.shape[0]
    neg = jnp.float32(-1e9)

    # In-VMEM broadcast of the shared context (no HBM N-way copy).
    ctx_b = jnp.broadcast_to(ctx[None, :, :], (N, T, D2))

    # Similarity (batched, no in-kernel transpose).
    s = jnp.einsum('njd,ntd->njt', q, ctx_b,
                   preferred_element_type=jnp.float32)               # (N, J, T)
    s_c = s + ((1.0 - cm) * neg)[:, None, :]                          # mask context

    a = jax.nn.softmax(s_c, axis=-1)                                  # (N, J, T)
    c2q = jnp.einsum('njt,ntd->njd', a, ctx_b,
                     preferred_element_type=jnp.float32)              # (N, J, 2H)

    m = jnp.max(s_c, axis=-1)                                         # (N, J)
    m = m + (1.0 - qm) * neg                                          # mask query
    b_w = jax.nn.softmax(m, axis=-1)                                  # (N, J)
    q2c_vec = jnp.sum(b_w[:, :, None] * q, axis=1)                    # (N, 2H)
    q2c = jnp.broadcast_to(q2c_vec[:, None, :], (N, J, D2))           # (N, J, 2H)

    g_ref[...] = jnp.concatenate([q, c2q, q * c2q, q * q2c], axis=-1)  # (N, J, 8H)
    c2q_ref[...] = c2q
    q2c_ref[...] = q2c


def bidaf(context_2d, queries, context_mask, query_masks):
    """context_2d [T,2H] (shared), queries [N,J,2H], masks [1,T]/[N,J].
    Returns (G [N,J,8H], c2q [N,J,2H], q2c [N,J,2H])."""
    T, D2 = context_2d.shape
    N, J, _ = queries.shape
    return pl.pallas_call(
        _bidaf_kernel,
        out_shape=(jax.ShapeDtypeStruct((N, J, 4 * D2), jnp.float32),
                   jax.ShapeDtypeStruct((N, J, D2), jnp.float32),
                   jax.ShapeDtypeStruct((N, J, D2), jnp.float32)),
    )(context_2d, queries,
      context_mask.astype(jnp.float32), query_masks.astype(jnp.float32))


# ----------------------------------------------------------------------------
# Final scoring: query_modeled (1,4H) @ answer_modeled^T (4H,N) -> (1,N)
# (lane-major output; the transpose of the answers happens in plain JAX
#  outside the kernel).
# ----------------------------------------------------------------------------
def _score_kernel(q_ref, a_ref, o_ref):
    o_ref[...] = jnp.dot(q_ref[...], a_ref[...],
                         preferred_element_type=jnp.float32)


def score_matmul(query_modeled, answer_modeled):
    """query_modeled (1,4H), answer_modeled (N,4H) -> scores (1,N)."""
    N = answer_modeled.shape[0]
    return pl.pallas_call(
        _score_kernel,
        out_shape=jax.ShapeDtypeStruct((1, N), jnp.float32),
    )(query_modeled, answer_modeled.T)


# ----------------------------------------------------------------------------
# Parameter init (deterministic, PyTorch-style uniform(-1/sqrt(H), 1/sqrt(H)))
# Weights stored per direction (axis 0: fwd, bwd) and per gate (axis 1: r,z,n).
# ----------------------------------------------------------------------------
def init_gru_params(key, input_size, hidden_size):
    s = 1.0 / math.sqrt(hidden_size)
    ks = jax.random.split(key, 4)

    def u(k, shape):
        return jax.random.uniform(k, shape, jnp.float32, minval=-s, maxval=s)

    return dict(
        wih=u(ks[0], (2, 3, input_size, hidden_size)),
        whh=u(ks[1], (2, 3, hidden_size, hidden_size)),
        bih=u(ks[2], (2, 3, 1, hidden_size)),
        bhh=u(ks[3], (2, 3, 1, hidden_size)),
    )


def init_params(key, embed_size, hidden_size):
    k1, k2, k3, k4 = jax.random.split(key, 4)
    return dict(
        ctx1=init_gru_params(k1, embed_size, hidden_size),          # contextual_embedding_layer
        model1=init_gru_params(k2, 8 * hidden_size, hidden_size),   # modeling_layer1
        ctx2=init_gru_params(k3, embed_size, hidden_size),          # contextual_embedding_layer_2
        model2=init_gru_params(k4, 8 * hidden_size, hidden_size),   # modeling_layer2
    )


# ----------------------------------------------------------------------------
# ContextMRR_Sep.forward (dropout = identity)
# ----------------------------------------------------------------------------
def context_mrr_sep_forward(params,
                            batch_query, batch_query_mask,
                            batch_context, batch_context_mask,
                            batch_candidates_sorted,
                            batch_candidate_masks_sorted,
                            batch_candidate_unsort,
                            gold_index):
    query_embedded = batch_query[None]                   # (1, J, E)
    context_embedded = batch_context[None]               # (1, T, E)

    # ---- BiDAF 1 ----
    query_encoded, q_hidden = bigru(query_embedded, params["ctx1"])
    query_encoded_hidden = jnp.concatenate([q_hidden[0], q_hidden[1]], axis=1)   # (1, 2H)
    context_encoded, _ = bigru(context_embedded, params["ctx1"])

    qmask = batch_query_mask[None]                       # (1, J)
    cmask = batch_context_mask[None]                     # (1, T)
    query_attention_encoded, _, _ = bidaf(context_encoded[0], query_encoded,
                                          cmask, qmask)                          # (1, J, 8H)

    _, q_mod_hidden = bigru(query_attention_encoded, params["model1"])
    query_modeled = jnp.concatenate(
        [query_encoded_hidden, q_mod_hidden[0], q_mod_hidden[1]], axis=1)        # (1, 4H)

    # ---- BiDAF 2 ----
    context_encoded_2, _ = bigru(context_embedded, params["ctx2"])
    cand_encoded, cand_hidden = bigru(batch_candidates_sorted, params["ctx2"])
    batch_candidates_hidden = jnp.concatenate([cand_hidden[0], cand_hidden[1]], axis=1)  # (N, 2H)

    # Shared context passed once; no N-way HBM broadcast of context/mask.
    answer_attention_encoded, _, _ = bidaf(context_encoded_2[0], cand_encoded,
                                           cmask, batch_candidate_masks_sorted)  # (N, JC, 8H)

    _, ans_hidden = bigru(answer_attention_encoded, params["model2"])
    answer_hidden_state = jnp.concatenate(
        [batch_candidates_hidden, ans_hidden[0], ans_hidden[1]], axis=1)          # (N, 4H)
    answer_modeled = answer_hidden_state                                          # dropout = identity

    # ---- scoring, loss, ranking ----
    scores_1n = score_matmul(query_modeled, answer_modeled)                       # (1, N)
    answer_scores = scores_1n.T                                                   # (N, 1)
    answer_scores_unsorted = answer_scores[batch_candidate_unsort]                # (N, 1)

    logits = answer_scores_unsorted.T                                             # (1, N)
    log_probs = jax.nn.log_softmax(logits, axis=-1)
    loss = -log_probs[0, gold_index[0]]                                           # CE, batch=1, mean

    log_sm = jax.nn.log_softmax(answer_scores_unsorted, axis=0)                   # (N, 1)
    indices = jnp.argsort(-log_sm, axis=0)                                        # descending
    return loss, indices


# ----------------------------------------------------------------------------
if __name__ == "__main__":
    E = 16        # embed_size
    H = 16        # hidden_size
    J = 8         # query length
    T = 12        # context length
    N = 4         # number of candidates
    JC = 6        # candidate length

    key = jax.random.PRNGKey(0)
    kp, kq, kc, kcand = jax.random.split(key, 4)

    params = init_params(kp, E, H)

    batch_query = jax.random.normal(kq, (J, E), jnp.float32)
    batch_context = jax.random.normal(kc, (T, E), jnp.float32)
    batch_candidates_sorted = jax.random.normal(kcand, (N, JC, E), jnp.float32)

    batch_query_mask = jnp.ones((J,), jnp.float32)
    batch_context_mask = jnp.ones((T,), jnp.float32)
    batch_candidate_masks_sorted = jnp.ones((N, JC), jnp.float32)

    # full lengths -> pack_padded_sequence is the identity (see TODO above)
    batch_candidate_unsort = jnp.array([2, 0, 3, 1], jnp.int32)
    gold_index = jnp.array([1], jnp.int32)

    loss, indices = context_mrr_sep_forward(
        params,
        batch_query, batch_query_mask,
        batch_context, batch_context_mask,
        batch_candidates_sorted,
        batch_candidate_masks_sorted,
        batch_candidate_unsort,
        gold_index)

    jax.block_until_ready((loss, indices))
    assert jnp.isfinite(loss)
    assert indices.shape == (N, 1)
    print("KERNEL_OK")
</pallas_src>

<mosaic_0001>
module attributes {stable_mosaic.version = 11 : i64} {
  func.func @_bigru_kernel(%arg0: i32, %arg1: memref<8x16xf32, #tpu.memory_space<vmem>>, %arg2: memref<1x3x16x16xf32, #tpu.memory_space<vmem>>, %arg3: memref<1x3x16x16xf32, #tpu.memory_space<vmem>>, %arg4: memref<1x3x1x16xf32, #tpu.memory_space<vmem>>, %arg5: memref<1x3x1x16xf32, #tpu.memory_space<vmem>>, %arg6: memref<1x8x16xf32, #tpu.memory_space<vmem>>, %arg7: memref<1x1x16xf32, #tpu.memory_space<vmem>>, %arg8: memref<1x16xf32, #tpu.memory_space<vmem>>, %arg9: memref<8x16xf32, #tpu.memory_space<vmem>>, %arg10: memref<8x16xf32, #tpu.memory_space<vmem>>, %arg11: memref<8x16xf32, #tpu.memory_space<vmem>>) attributes {dimension_semantics = [#tpu.dimension_semantics<parallel>], iteration_bounds = array<i64: 2>, scalar_prefetch = 0 : i64, scratch_operands = 4 : i64, tpu.core_type = #tpu.core_type<tc>, window_params = [{pipeline_mode = #tpu.pipeline_mode<synchronous>, transform_indices = @transform_0, window_bounds = array<i64: 8, 16>}, {transform_indices = @transform_1, window_bounds = array<i64: 1, 3, 16, 16>}, {transform_indices = @transform_2, window_bounds = array<i64: 1, 3, 16, 16>}, {transform_indices = @transform_3, window_bounds = array<i64: 1, 3, 1, 16>}, {transform_indices = @transform_4, window_bounds = array<i64: 1, 3, 1, 16>}, {transform_indices = @transform_5, window_bounds = array<i64: 1, 8, 16>}, {transform_indices = @transform_6, window_bounds = array<i64: 1, 1, 16>}]} {
    %c0 = arith.constant 0 : index
    %c0_0 = arith.constant 0 : index
    %0 = vector.load %arg1[%c0, %c0_0] : memref<8x16xf32, #tpu.memory_space<vmem>>, vector<8x16xf32>
    %c0_1 = arith.constant 0 : index
    %c0_2 = arith.constant 0 : index
    %c0_3 = arith.constant 0 : index
    %c0_4 = arith.constant 0 : index
    %1 = vector.load %arg2[%c0_1, %c0_2, %c0_3, %c0_4] : memref<1x3x16x16xf32, #tpu.memory_space<vmem>>, vector<1x1x16x16xf32>
    %2 = vector.shape_cast %1 : vector<1x1x16x16xf32> to vector<16x16xf32>
    %cst = arith.constant dense<0.000000e+00> : vector<8x16xf32>
    %3 = tpu.matmul %0, %2, %cst {dimension_numbers = #tpu.dot_dimension_numbers<[1], [0], [0], [1], [0, 0, 1, 1], [], []>} : vector<8x16xf32>, vector<16x16xf32>, vector<8x16xf32> -> vector<8x16xf32>
    %c0_5 = arith.constant 0 : index
    %c0_6 = arith.constant 0 : index
    %c0_7 = arith.constant 0 : index
    %c0_8 = arith.constant 0 : index
    %4 = vector.load %arg4[%c0_5, %c0_6, %c0_7, %c0_8] : memref<1x3x1x16xf32, #tpu.memory_space<vmem>>, vector<1x1x1x16xf32>
    %5 = vector.shape_cast %4 : vector<1x1x1x16xf32> to vector<1x16xf32>
    %6 = vector.broadcast %5 : vector<1x16xf32> to vector<8x16xf32>
    %7 = arith.addf %3, %6 : vector<8x16xf32>
    %c0_9 = arith.constant 0 : index
    %c0_10 = arith.constant 0 : index
    %8 = vector.load %arg9[%c0_9, %c0_10] : memref<8x16xf32, #tpu.memory_space<vmem>>, vector<8x16xf32>
    tpu.vector_store %arg9[%c0_9, %c0_10], %7 {strides = array<i32>} : memref<8x16xf32, #tpu.memory_space<vmem>>, vector<8x16xf32>,
    %c0_11 = arith.constant 0 : index
    %c1 = arith.constant 1 : index
    %c0_12 = arith.constant 0 : index
    %c0_13 = arith.constant 0 : index
    %9 = vector.load %arg2[%c0_11, %c1, %c0_12, %c0_13] : memref<1x3x16x16xf32, #tpu.memory_space<vmem>>, vector<1x1x16x16xf32>
    %10 = vector.shape_cast %9 : vector<1x1x16x16xf32> to vector<16x16xf32>
    %cst_14 = arith.constant dense<0.000000e+00> : vector<8x16xf32>
    %11 = tpu.matmul %0, %10, %cst_14 {dimension_numbers = #tpu.dot_dimension_numbers<[1], [0], [0], [1], [0, 0, 1, 1], [], []>} : vector<8x16xf32>, vector<16x16xf32>, vector<8x16xf32> -> vector<8x16xf32>
    %c0_15 = arith.constant 0 : index
    %c1_16 = arith.constant 1 : index
    %c0_17 = arith.constant 0 : index
    %c0_18 = arith.constant 0 : index
    %12 = vector.load %arg4[%c0_15, %c1_16, %c0_17, %c0_18] : memref<1x3x1x16xf32, #tpu.memory_space<vmem>>, vector<1x1x1x16xf32>
    %13 = vector.shape_cast %12 : vector<1x1x1x16xf32> to vector<1x16xf32>
    %14 = vector.broadcast %13 : vector<1x16xf32> to vector<8x16xf32>
    %15 = arith.addf %11, %14 : vector<8x16xf32>
    %c0_19 = arith.constant 0 : index
    %c0_20 = arith.constant 0 : index
    %16 = vector.load %arg10[%c0_19, %c0_20] : memref<8x16xf32, #tpu.memory_space<vmem>>, vector<8x16xf32>
    tpu.vector_store %arg10[%c0_19, %c0_20], %15 {strides = array<i32>} : memref<8x16xf32, #tpu.memory_space<vmem>>, vector<8x16xf32>,
    %c0_21 = arith.constant 0 : index
    %c2 = arith.constant 2 : index
    %c0_22 = arith.constant 0 : index
    %c0_23 = arith.constant 0 : index
    %17 = vector.load %arg2[%c0_21, %c2, %c0_22, %c0_23] : memref<1x3x16x16xf32, #tpu.memory_space<vmem>>, vector<1x1x16x16xf32>
    %18 = vector.shape_cast %17 : vector<1x1x16x16xf32> to vector<16x16xf32>
    %cst_24 = arith.constant dense<0.000000e+00> : vector<8x16xf32>
    %19 = tpu.matmul %0, %18, %cst_24 {dimension_numbers = #tpu.dot_dimension_numbers<[1], [0], [0], [1], [0, 0, 1, 1], [], []>} : vector<8x16xf32>, vector<16x16xf32>, vector<8x16xf32> -> vector<8x16xf32>
    %c0_25 = arith.constant 0 : index
    %c2_26 = arith.constant 2 : index
    %c0_27 = arith.constant 0 : index
    %c0_28 = arith.constant 0 : index
    %20 = vector.load %arg4[%c0_25, %c2_26, %c0_27, %c0_28] : memref<1x3x1x16xf32, #tpu.memory_space<vmem>>, vector<1x1x1x16xf32>
    %21 = vector.shape_cast %20 : vector<1x1x1x16xf32> to vector<1x16xf32>
    %22 = vector.broadcast %21 : vector<1x16xf32> to vector<8x16xf32>
    %23 = arith.addf %19, %22 : vector<8x16xf32>
    %c0_29 = arith.constant 0 : index
    %c0_30 = arith.constant 0 : index
    %24 = vector.load %arg11[%c0_29, %c0_30] : memref<8x16xf32, #tpu.memory_space<vmem>>, vector<8x16xf32>
    tpu.vector_store %arg11[%c0_29, %c0_30], %23 {strides = array<i32>} : memref<8x16xf32, #tpu.memory_space<vmem>>, vector<8x16xf32>,
    %cst_31 = arith.constant 0.000000e+00 : f32
    %25 = vector.broadcast %cst_31 : f32 to vector<1x16xf32>
    %c0_32 = arith.constant 0 : index
    %c0_33 = arith.constant 0 : index
    %26 = vector.load %arg8[%c0_32, %c0_33] : memref<1x16xf32, #tpu.memory_space<vmem>>, vector<1x16xf32>
    tpu.vector_store %arg8[%c0_32, %c0_33], %25 {strides = array<i32>} : memref<1x16xf32, #tpu.memory_space<vmem>>, vector<1x16xf32>,
    %c0_34 = arith.constant 0 : index
    %c0_35 = arith.constant 0 : index
    %c0_36 = arith.constant 0 : index
    %c0_37 = arith.constant 0 : index
    %27 = vector.load %arg3[%c0_34, %c0_35, %c0_36, %c0_37] : memref<1x3x16x16xf32, #tpu.memory_space<vmem>>, vector<1x1x16x16xf32>
    %28 = vector.shape_cast %27 : vector<1x1x16x16xf32> to vector<16x16xf32>
    %c0_38 = arith.constant 0 : index
    %c1_39 = arith.constant 1 : index
    %c0_40 = arith.constant 0 : index
    %c0_41 = arith.constant 0 : index
    %29 = vector.load %arg3[%c0_38, %c1_39, %c0_40, %c0_41] : memref<1x3x16x16xf32, #tpu.memory_space<vmem>>, vector<1x1x16x16xf32>
    %30 = vector.shape_cast %29 : vector<1x1x16x16xf32> to vector<16x16xf32>
    %c0_42 = arith.constant 0 : index
    %c2_43 = arith.constant 2 : index
    %c0_44 = arith.constant 0 : index
    %c0_45 = arith.constant 0 : index
    %31 = vector.load %arg3[%c0_42, %c2_43, %c0_44, %c0_45] : memref<1x3x16x16xf32, #tpu.memory_space<vmem>>, vector<1x1x16x16xf32>
    %32 = vector.shape_cast %31 : vector<1x1x16x16xf32> to vector<16x16xf32>
    %c0_46 = arith.constant 0 : index
    %c0_47 = arith.constant 0 : index
    %c0_48 = arith.constant 0 : index
    %c0_49 = arith.constant 0 : index
    %33 = vector.load %arg5[%c0_46, %c0_47, %c0_48, %c0_49] : memref<1x3x1x16xf32, #tpu.memory_space<vmem>>, vector<1x1x1x16xf32>
    %34 = vector.shape_cast %33 : vector<1x1x1x16xf32> to vector<1x16xf32>
    %c0_50 = arith.constant 0 : index
    %c1_51 = arith.constant 1 : index
    %c0_52 = arith.constant 0 : index
    %c0_53 = arith.constant 0 : index
    %35 = vector.load %arg5[%c0_50, %c1_51, %c0_52, %c0_53] : memref<1x3x1x16xf32, #tpu.memory_space<vmem>>, vector<1x1x1x16xf32>
    %36 = vector.shape_cast %35 : vector<1x1x1x16xf32> to vector<1x16xf32>
    %c0_54 = arith.constant 0 : index
    %c2_55 = arith.constant 2 : index
    %c0_56 = arith.constant 0 : index
    %c0_57 = arith.constant 0 : index
    %37 = vector.load %arg5[%c0_54, %c2_55, %c0_56, %c0_57] : memref<1x3x1x16xf32, #tpu.memory_space<vmem>>, vector<1x1x1x16xf32>
    %38 = vector.shape_cast %37 : vector<1x1x1x16xf32> to vector<1x16xf32>
    %c0_i32 = arith.constant 0 : i32
    %c0_i32_58 = arith.constant 0 : i32
    %39 = arith.cmpi eq, %arg0, %c0_i32_58 : i32
    %c7_i32 = arith.constant 7 : i32
    %40 = arith.subi %c7_i32, %c0_i32 : i32
    %41 = arith.select %39, %c0_i32, %40 : i32
    %c1_i32 = arith.constant 1 : i32
    %42 = arith.muli %41, %c1_i32 : i32
    %c0_59 = arith.constant 0 : index
    %c0_60 = arith.constant 0 : index
    %43 = vector.load %arg8[%c0_59, %c0_60] : memref<1x16xf32, #tpu.memory_space<vmem>>, vector<1x16xf32>
    %cst_61 = arith.constant dense<0.000000e+00> : vector<1x16xf32>
    %44 = tpu.matmul %43, %28, %cst_61 {dimension_numbers = #tpu.dot_dimension_numbers<[1], [0], [0], [1], [0, 0, 1, 1], [], []>} : vector<1x16xf32>, vector<16x16xf32>, vector<1x16xf32> -> vector<1x16xf32>
    %45 = arith.addf %44, %34 : vector<1x16xf32>
    %cst_62 = arith.constant dense<0.000000e+00> : vector<1x16xf32>
    %46 = tpu.matmul %43, %30, %cst_62 {dimension_numbers = #tpu.dot_dimension_numbers<[1], [0], [0], [1], [0, 0, 1, 1], [], []>} : vector<1x16xf32>, vector<16x16xf32>, vector<1x16xf32> -> vector<1x16xf32>
    %47 = arith.addf %46, %36 : vector<1x16xf32>
    %cst_63 = arith.constant dense<0.000000e+00> : vector<1x16xf32>
    %48 = tpu.matmul %43, %32, %cst_63 {dimension_numbers = #tpu.dot_dimension_numbers<[1], [0], [0], [1], [0, 0, 1, 1], [], []>} : vector<1x16xf32>, vector<16x16xf32>, vector<1x16xf32> -> vector<1x16xf32>
    %49 = arith.addf %48, %38 : vector<1x16xf32>
    %50 = arith.index_cast %42 : i32 to index
    %c0_64 = arith.constant 0 : index
    %51 = vector.load %arg9[%50, %c0_64] : memref<8x16xf32, #tpu.memory_space<vmem>>, vector<1x16xf32>
    %52 = arith.addf %51, %45 : vector<1x16xf32>
    %53 = arith.negf %52 : vector<1x16xf32>
    %54 = math.exp %53 : vector<1x16xf32>
    %cst_65 = arith.constant 1.000000e+00 : f32
    %55 = vector.broadcast %cst_65 : f32 to vector<1x16xf32>
    %56 = arith.addf %55, %54 : vector<1x16xf32>
    %57 = arith.divf %55, %56 : vector<1x16xf32>
    %58 = arith.index_cast %42 : i32 to index
    %c0_66 = arith.constant 0 : index
    %59 = vector.load %arg10[%58, %c0_66] : memref<8x16xf32, #tpu.memory_space<vmem>>, vector<1x16xf32>
    %60 = arith.addf %59, %47 : vector<1x16xf32>
    %61 = arith.negf %60 : vector<1x16xf32>
    %62 = math.exp %61 : vector<1x16xf32>
    %cst_67 = arith.constant 1.000000e+00 : f32
    %63 = vector.broadcast %cst_67 : f32 to vector<1x16xf32>
    %64 = arith.addf %63, %62 : vector<1x16xf32>
    %65 = arith.divf %63, %64 : vector<1x16xf32>
    %66 = arith.index_cast %42 : i32 to index
    %c0_68 = arith.constant 0 : index
    %67 = vector.load %arg11[%66, %c0_68] : memref<8x16xf32, #tpu.memory_space<vmem>>, vector<1x16xf32>
    %68 = arith.mulf %57, %49 : vector<1x16xf32>
    %69 = arith.addf %67, %68 : vector<1x16xf32>
    %70 = math.tanh %69 : vector<1x16xf32>
    %cst_69 = arith.constant 1.000000e+00 : f32
    %71 = vector.broadcast %cst_69 : f32 to vector<1x16xf32>
    %72 = arith.subf %71, %65 : vector<1x16xf32>
    %73 = arith.mulf %72, %70 : vector<1x16xf32>
    %74 = arith.mulf %65, %43 : vector<1x16xf32>
    %75 = arith.addf %73, %74 : vector<1x16xf32>
    %c0_70 = arith.constant 0 : index
    %c0_71 = arith.constant 0 : index
    %76 = vector.load %arg8[%c0_70, %c0_71] : memref<1x16xf32, #tpu.memory_space<vmem>>, vector<1x16xf32>
    tpu.vector_store %arg8[%c0_70, %c0_71], %75 {strides = array<i32>} : memref<1x16xf32, #tpu.memory_space<vmem>>, vector<1x16xf32>,
    %c0_72 = arith.constant 0 : index
    %77 = arith.index_cast %42 : i32 to index
    %c0_73 = arith.constant 0 : index
    %78 = vector.load %arg6[%c0_72, %77, %c0_73] : memref<1x8x16xf32, #tpu.memory_space<vmem>>, vector<1x1x16xf32>
    %79 = vector.shape_cast %78 : vector<1x1x16xf32> to vector<1x16xf32>
    %80 = vector.shape_cast %75 : vector<1x16xf32> to vector<1x1x16xf32>
    tpu.vector_store %arg6[%c0_72, %77, %c0_73], %80 {strides = array<i32>} : memref<1x8x16xf32, #tpu.memory_space<vmem>>, vector<1x1x16xf32>,
    %c1_i32_74 = arith.constant 1 : i32
    %c0_i32_75 = arith.constant 0 : i32
    %81 = arith.cmpi eq, %arg0, %c0_i32_75 : i32
    %c7_i32_76 = arith.constant 7 : i32
    %82 = arith.subi %c7_i32_76, %c1_i32_74 : i32
    %83 = arith.select %81, %c1_i32_74, %82 : i32
    %c1_i32_77 = arith.constant 1 : i32
    %84 = arith.muli %83, %c1_i32_77 : i32
    %c0_78 = arith.constant 0 : index
    %c0_79 = arith.constant 0 : index
    %85 = vector.load %arg8[%c0_78, %c0_79] : memref<1x16xf32, #tpu.memory_space<vmem>>, vector<1x16xf32>
    %cst_80 = arith.constant dense<0.000000e+00> : vector<1x16xf32>
    %86 = tpu.matmul %85, %28, %cst_80 {dimension_numbers = #tpu.dot_dimension_numbers<[1], [0], [0], [1], [0, 0, 1, 1], [], []>} : vector<1x16xf32>, vector<16x16xf32>, vector<1x16xf32> -> vector<1x16xf32>
    %87 = arith.addf %86, %34 : vector<1x16xf32>
    %cst_81 = arith.constant dense<0.000000e+00> : vector<1x16xf32>
    %88 = tpu.matmul %85, %30, %cst_81 {dimension_numbers = #tpu.dot_dimension_numbers<[1], [0], [0], [1], [0, 0, 1, 1], [], []>} : vector<1x16xf32>, vector<16x16xf32>, vector<1x16xf32> -> vector<1x16xf32>
    %89 = arith.addf %88, %36 : vector<1x16xf32>
    %cst_82 = arith.constant dense<0.000000e+00> : vector<1x16xf32>
    %90 = tpu.matmul %85, %32, %cst_82 {dimension_numbers = #tpu.dot_dimension_numbers<[1], [0], [0], [1], [0, 0, 1, 1], [], []>} : vector<1x16xf32>, vector<16x16xf32>, vector<1x16xf32> -> vector<1x16xf32>
    %91 = arith.addf %90, %38 : vector<1x16xf32>
    %92 = arith.index_cast %84 : i32 to index
    %c0_83 = arith.constant 0 : index
    %93 = vector.load %arg9[%92, %c0_83] : memref<8x16xf32, #tpu.memory_space<vmem>>, vector<1x16xf32>
    %94 = arith.addf %93, %87 : vector<1x16xf32>
    %95 = arith.negf %94 : vector<1x16xf32>
    %96 = math.exp %95 : vector<1x16xf32>
    %cst_84 = arith.constant 1.000000e+00 : f32
    %97 = vector.broadcast %cst_84 : f32 to vector<1x16xf32>
    %98 = arith.addf %97, %96 : vector<1x16xf32>
    %99 = arith.divf %97, %98 : vector<1x16xf32>
    %100 = arith.index_cast %84 : i32 to index
    %c0_85 = arith.constant 0 : index
    %101 = vector.load %arg10[%100, %c0_85] : memref<8x16xf32, #tpu.memory_space<vmem>>, vector<1x16xf32>
    %102 = arith.addf %101, %89 : vector<1x16xf32>
    %103 = arith.negf %102 : vector<1x16xf32>
    %104 = math.exp %103 : vector<1x16xf32>
    %cst_86 = arith.constant 1.000000e+00 : f32
    %105 = vector.broadcast %cst_86 : f32 to vector<1x16xf32>
    %106 = arith.addf %105, %104 : vector<1x16xf32>
    %107 = arith.divf %105, %106 : vector<1x16xf32>
    %108 = arith.index_cast %84 : i32 to index
    %c0_87 = arith.constant 0 : index
    %109 = vector.load %arg11[%108, %c0_87] : memref<8x16xf32, #tpu.memory_space<vmem>>, vector<1x16xf32>
    %110 = arith.mulf %99, %91 : vector<1x16xf32>
    %111 = arith.addf %109, %110 : vector<1x16xf32>
    %112 = math.tanh %111 : vector<1x16xf32>
    %cst_88 = arith.constant 1.000000e+00 : f32
    %113 = vector.broadcast %cst_88 : f32 to vector<1x16xf32>
    %114 = arith.subf %113, %107 : vector<1x16xf32>
    %115 = arith.mulf %114, %112 : vector<1x16xf32>
    %116 = arith.mulf %107, %85 : vector<1x16xf32>
    %117 = arith.addf %115, %116 : vector<1x16xf32>
    %c0_89 = arith.constant 0 : index
    %c0_90 = arith.constant 0 : index
    %118 = vector.load %arg8[%c0_89, %c0_90] : memref<1x16xf32, #tpu.memory_space<vmem>>, vector<1x16xf32>
    tpu.vector_store %arg8[%c0_89, %c0_90], %117 {strides = array<i32>} : memref<1x16xf32, #tpu.memory_space<vmem>>, vector<1x16xf32>,
    %c0_91 = arith.constant 0 : index
    %119 = arith.index_cast %84 : i32 to index
    %c0_92 = arith.constant 0 : index
    %120 = vector.load %arg6[%c0_91, %119, %c0_92] : memref<1x8x16xf32, #tpu.memory_space<vmem>>, vector<1x1x16xf32>
    %121 = vector.shape_cast %120 : vector<1x1x16xf32> to vector<1x16xf32>
    %122 = vector.shape_cast %117 : vector<1x16xf32> to vector<1x1x16xf32>
    tpu.vector_store %arg6[%c0_91, %119, %c0_92], %122 {strides = array<i32>} : memref<1x8x16xf32, #tpu.memory_space<vmem>>, vector<1x1x16xf32>,
    %c2_i32 = arith.constant 2 : i32
    %c0_i32_93 = arith.constant 0 : i32
    %123 = arith.cmpi eq, %arg0, %c0_i32_93 : i32
    %c7_i32_94 = arith.constant 7 : i32
    %124 = arith.subi %c7_i32_94, %c2_i32 : i32
    %125 = arith.select %123, %c2_i32, %124 : i32
    %c1_i32_95 = arith.constant 1 : i32
    %126 = arith.muli %125, %c1_i32_95 : i32
    %c0_96 = arith.constant 0 : index
    %c0_97 = arith.constant 0 : index
    %127 = vector.load %arg8[%c0_96, %c0_97] : memref<1x16xf32, #tpu.memory_space<vmem>>, vector<1x16xf32>
    %cst_98 = arith.constant dense<0.000000e+00> : vector<1x16xf32>
    %128 = tpu.matmul %127, %28, %cst_98 {dimension_numbers = #tpu.dot_dimension_numbers<[1], [0], [0], [1], [0, 0, 1, 1], [], []>} : vector<1x16xf32>, vector<16x16xf32>, vector<1x16xf32> -> vector<1x16xf32>
    %129 = arith.addf %128, %34 : vector<1x16xf32>
    %cst_99 = arith.constant dense<0.000000e+00> : vector<1x16xf32>
    %130 = tpu.matmul %127, %30, %cst_99 {dimension_numbers = #tpu.dot_dimension_numbers<[1], [0], [0], [1], [0, 0, 1, 1], [], []>} : vector<1x16xf32>, vector<16x16xf32>, vector<1x16xf32> -> vector<1x16xf32>
    %131 = arith.addf %130, %36 : vector<1x16xf32>
    %cst_100 = arith.constant dense<0.000000e+00> : vector<1x16xf32>
    %132 = tpu.matmul %127, %32, %cst_100 {dimension_numbers = #tpu.dot_dimension_numbers<[1], [0], [0], [1], [0, 0, 1, 1], [], []>} : vector<1x16xf32>, vector<16x16xf32>, vector<1x16xf32> -> vector<1x16xf32>
    %133 = arith.addf %132, %38 : vector<1x16xf32>
    %134 = arith.index_cast %126 : i32 to index
    %c0_101 = arith.constant 0 : index
    %135 = vector.load %arg9[%134, %c0_101] : memref<8x16xf32, #tpu.memory_space<vmem>>, vector<1x16xf32>
    %136 = arith.addf %135, %129 : vector<1x16xf32>
    %137 = arith.negf %136 : vector<1x16xf32>
    %138 = math.exp %137 : vector<1x16xf32>
    %cst_102 = arith.constant 1.000000e+00 : f32
    %139 = vector.broadcast %cst_102 : f32 to vector<1x16xf32>
    %140 = arith.addf %139, %138 : vector<1x16xf32>
    %141 = arith.divf %139, %140 : vector<1x16xf32>
    %142 = arith.index_cast %126 : i32 to index
    %c0_103 = arith.constant 0 : index
    %143 = vector.load %arg10[%142, %c0_103] : memref<8x16xf32, #tpu.memory_space<vmem>>, vector<1x16xf32>
    %144 = arith.addf %143, %131 : vector<1x16xf32>
    %145 = arith.negf %144 : vector<1x16xf32>
    %146 = math.exp %145 : vector<1x16xf32>
    %cst_104 = arith.constant 1.000000e+00 : f32
    %147 = vector.broadcast %cst_104 : f32 to vector<1x16xf32>
    %148 = arith.addf %147, %146 : vector<1x16xf32>
    %149 = arith.divf %147, %148 : vector<1x16xf32>
    %150 = arith.index_cast %126 : i32 to index
    %c0_105 = arith.constant 0 : index
    %151 = vector.load %arg11[%150, %c0_105] : memref<8x16xf32, #tpu.memory_space<vmem>>, vector<1x16xf32>
    %152 = arith.mulf %141, %133 : vector<1x16xf32>
    %153 = arith.addf %151, %152 : vector<1x16xf32>
    %154 = math.tanh %153 : vector<1x16xf32>
    %cst_106 = arith.constant 1.000000e+00 : f32
    %155 = vector.broadcast %cst_106 : f32 to vector<1x16xf32>
    %156 = arith.subf %155, %149 : vector<1x16xf32>
    %157 = arith.mulf %156, %154 : vector<1x16xf32>
    %158 = arith.mulf %149, %127 : vector<1x16xf32>
    %159 = arith.addf %157, %158 : vector<1x16xf32>
    %c0_107 = arith.constant 0 : index
    %c0_108 = arith.constant 0 : index
    %160 = vector.load %arg8[%c0_107, %c0_108] : memref<1x16xf32, #tpu.memory_space<vmem>>, vector<1x16xf32>
    tpu.vector_store %arg8[%c0_107, %c0_108], %159 {strides = array<i32>} : memref<1x16xf32, #tpu.memory_space<vmem>>, vector<1x16xf32>,
    %c0_109 = arith.constant 0 : index
    %161 = arith.index_cast %126 : i32 to index
    %c0_110 = arith.constant 0 : index
    %162 = vector.load %arg6[%c0_109, %161, %c0_110] : memref<1x8x16xf32, #tpu.memory_space<vmem>>, vector<1x1x16xf32>
    %163 = vector.shape_cast %162 : vector<1x1x16xf32> to vector<1x16xf32>
    %164 = vector.shape_cast %159 : vector<1x16xf32> to vector<1x1x16xf32>
    tpu.vector_store %arg6[%c0_109, %161, %c0_110], %164 {strides = array<i32>} : memref<1x8x16xf32, #tpu.memory_space<vmem>>, vector<1x1x16xf32>,
    %c3_i32 = arith.constant 3 : i32
    %c0_i32_111 = arith.constant 0 : i32
    %165 = arith.cmpi eq, %arg0, %c0_i32_111 : i32
    %c7_i32_112 = arith.constant 7 : i32
    %166 = arith.subi %c7_i32_112, %c3_i32 : i32
    %167 = arith.select %165, %c3_i32, %166 : i32
    %c1_i32_113 = arith.constant 1 : i32
    %168 = arith.muli %167, %c1_i32_113 : i32
    %c0_114 = arith.constant 0 : index
    %c0_115 = arith.constant 0 : index
    %169 = vector.load %arg8[%c0_114, %c0_115] : memref<1x16xf32, #tpu.memory_space<vmem>>, vector<1x16xf32>
    %cst_116 = arith.constant dense<0.000000e+00> : vector<1x16xf32>
    %170 = tpu.matmul %169, %28, %cst_116 {dimension_numbers = #tpu.dot_dimension_numbers<[1], [0], [0], [1], [0, 0, 1, 1], [], []>} : vector<1x16xf32>, vector<16x16xf32>, vector<1x16xf32> -> vector<1x16xf32>
    %171 = arith.addf %170, %34 : vector<1x16xf32>
    %cst_117 = arith.constant dense<0.000000e+00> : vector<1x16xf32>
    %172 = tpu.matmul %169, %30, %cst_117 {dimension_numbers = #tpu.dot_dimension_numbers<[1], [0], [0], [1], [0, 0, 1, 1], [], []>} : vector<1x16xf32>, vector<16x16xf32>, vector<1x16xf32> -> vector<1x16xf32>
    %173 = arith.addf %172, %36 : vector<1x16xf32>
    %cst_118 = arith.constant dense<0.000000e+00> : vector<1x16xf32>
    %174 = tpu.matmul %169, %32, %cst_118 {dimension_numbers = #tpu.dot_dimension_numbers<[1], [0], [0], [1], [0, 0, 1, 1], [], []>} : vector<1x16xf32>, vector<16x16xf32>, vector<1x16xf32> -> vector<1x16xf32>
    %175 = arith.addf %174, %38 : vector<1x16xf32>
    %176 = arith.index_cast %168 : i32 to index
    %c0_119 = arith.constant 0 : index
    %177 = vector.load %arg9[%176, %c0_119] : memref<8x16xf32, #tpu.memory_space<vmem>>, vector<1x16xf32>
    %178 = arith.addf %177, %171 : vector<1x16xf32>
    %179 = arith.negf %178 : vector<1x16xf32>
    %180 = math.exp %179 : vector<1x16xf32>
    %cst_120 = arith.constant 1.000000e+00 : f32
    %181 = vector.broadcast %cst_120 : f32 to vector<1x16xf32>
    %182 = arith.addf %181, %180 : vector<1x16xf32>
    %183 = arith.divf %181, %182 : vector<1x16xf32>
    %184 = arith.index_cast %168 : i32 to index
    %c0_121 = arith.constant 0 : index
    %185 = vector.load %arg10[%184, %c0_121] : memref<8x16xf32, #tpu.memory_space<vmem>>, vector<1x16xf32>
    %186 = arith.addf %185, %173 : vector<1x16xf32>
    %187 = arith.negf %186 : vector<1x16xf32>
    %188 = math.exp %187 : vector<1x16xf32>
    %cst_122 = arith.constant 1.000000e+00 : f32
    %189 = vector.broadcast %cst_122 : f32 to vector<1x16xf32>
    %190 = arith.addf %189, %188 : vector<1x16xf32>
    %191 = arith.divf %189, %190 : vector<1x16xf32>
    %192 = arith.index_cast %168 : i32 to index
    %c0_123 = arith.constant 0 : index
    %193 = vector.load %arg11[%192, %c0_123] : memref<8x16xf32, #tpu.memory_space<vmem>>, vector<1x16xf32>
    %194 = arith.mulf %183, %175 : vector<1x16xf32>
    %195 = arith.addf %193, %194 : vector<1x16xf32>
    %196 = math.tanh %195 : vector<1x16xf32>
    %cst_124 = arith.constant 1.000000e+00 : f32
    %197 = vector.broadcast %cst_124 : f32 to vector<1x16xf32>
    %198 = arith.subf %197, %191 : vector<1x16xf32>
    %199 = arith.mulf %198, %196 : vector<1x16xf32>
    %200 = arith.mulf %191, %169 : vector<1x16xf32>
    %201 = arith.addf %199, %200 : vector<1x16xf32>
    %c0_125 = arith.constant 0 : index
    %c0_126 = arith.constant 0 : index
    %202 = vector.load %arg8[%c0_125, %c0_126] : memref<1x16xf32, #tpu.memory_space<vmem>>, vector<1x16xf32>
    tpu.vector_store %arg8[%c0_125, %c0_126], %201 {strides = array<i32>} : memref<1x16xf32, #tpu.memory_space<vmem>>, vector<1x16xf32>,
    %c0_127 = arith.constant 0 : index
    %203 = arith.index_cast %168 : i32 to index
    %c0_128 = arith.constant 0 : index
    %204 = vector.load %arg6[%c0_127, %203, %c0_128] : memref<1x8x16xf32, #tpu.memory_space<vmem>>, vector<1x1x16xf32>
    %205 = vector.shape_cast %204 : vector<1x1x16xf32> to vector<1x16xf32>
    %206 = vector.shape_cast %201 : vector<1x16xf32> to vector<1x1x16xf32>
    tpu.vector_store %arg6[%c0_127, %203, %c0_128], %206 {strides = array<i32>} : memref<1x8x16xf32, #tpu.memory_space<vmem>>, vector<1x1x16xf32>,
    %c4_i32 = arith.constant 4 : i32
    %c0_i32_129 = arith.constant 0 : i32
    %207 = arith.cmpi eq, %arg0, %c0_i32_129 : i32
    %c7_i32_130 = arith.constant 7 : i32
    %208 = arith.subi %c7_i32_130, %c4_i32 : i32
    %209 = arith.select %207, %c4_i32, %208 : i32
    %c1_i32_131 = arith.constant 1 : i32
    %210 = arith.muli %209, %c1_i32_131 : i32
    %c0_132 = arith.constant 0 : index
    %c0_133 = arith.constant 0 : index
    %211 = vector.load %arg8[%c0_132, %c0_133] : memref<1x16xf32, #tpu.memory_space<vmem>>, vector<1x16xf32>
    %cst_134 = arith.constant dense<0.000000e+00> : vector<1x16xf32>
    %212 = tpu.matmul %211, %28, %cst_134 {dimension_numbers = #tpu.dot_dimension_numbers<[1], [0], [0], [1], [0, 0, 1, 1], [], []>} : vector<1x16xf32>, vector<16x16xf32>, vector<1x16xf32> -> vector<1x16xf32>
    %213 = arith.addf %212, %34 : vector<1x16xf32>
    %cst_135 = arith.constant dense<0.000000e+00> : vector<1x16xf32>
    %214 = tpu.matmul %211, %30, %cst_135 {dimension_numbers = #tpu.dot_dimension_numbers<[1], [0], [0], [1], [0, 0, 1, 1], [], []>} : vector<1x16xf32>, vector<16x16xf32>, vector<1x16xf32> -> vector<1x16xf32>
    %215 = arith.addf %214, %36 : vector<1x16xf32>
    %cst_136 = arith.constant dense<0.000000e+00> : vector<1x16xf32>
    %216 = tpu.matmul %211, %32, %cst_136 {dimension_numbers = #tpu.dot_dimension_numbers<[1], [0], [0], [1], [0, 0, 1, 1], [], []>} : vector<1x16xf32>, vector<16x16xf32>, vector<1x16xf32> -> vector<1x16xf32>
    %217 = arith.addf %216, %38 : vector<1x16xf32>
    %218 = arith.index_cast %210 : i32 to index
    %c0_137 = arith.constant 0 : index
    %219 = vector.load %arg9[%218, %c0_137] : memref<8x16xf32, #tpu.memory_space<vmem>>, vector<1x16xf32>
    %220 = arith.addf %219, %213 : vector<1x16xf32>
    %221 = arith.negf %220 : vector<1x16xf32>
    %222 = math.exp %221 : vector<1x16xf32>
    %cst_138 = arith.constant 1.000000e+00 : f32
    %223 = vector.broadcast %cst_138 : f32 to vector<1x16xf32>
    %224 = arith.addf %223, %222 : vector<1x16xf32>
    %225 = arith.divf %223, %224 : vector<1x16xf32>
    %226 = arith.index_cast %210 : i32 to index
    %c0_139 = arith.constant 0 : index
    %227 = vector.load %arg10[%226, %c0_139] : memref<8x16xf32, #tpu.memory_space<vmem>>, vector<1x16xf32>
    %228 = arith.addf %227, %215 : vector<1x16xf32>
    %229 = arith.negf %228 : vector<1x16xf32>
    %230 = math.exp %229 : vector<1x16xf32>
    %cst_140 = arith.constant 1.000000e+00 : f32
    %231 = vector.broadcast %cst_140 : f32 to vector<1x16xf32>
    %232 = arith.addf %231, %230 : vector<1x16xf32>
    %233 = arith.divf %231, %232 : vector<1x16xf32>
    %234 = arith.index_cast %210 : i32 to index
    %c0_141 = arith.constant 0 : index
    %235 = vector.load %arg11[%234, %c0_141] : memref<8x16xf32, #tpu.memory_space<vmem>>, vector<1x16xf32>
    %236 = arith.mulf %225, %217 : vector<1x16xf32>
    %237 = arith.addf %235, %236 : vector<1x16xf32>
    %238 = math.tanh %237 : vector<1x16xf32>
    %cst_142 = arith.constant 1.000000e+00 : f32
    %239 = vector.broadcast %cst_142 : f32 to vector<1x16xf32>
    %240 = arith.subf %239, %233 : vector<1x16xf32>
    %241 = arith.mulf %240, %238 : vector<1x16xf32>
    %242 = arith.mulf %233, %211 : vector<1x16xf32>
    %243 = arith.addf %241, %242 : vector<1x16xf32>
    %c0_143 = arith.constant 0 : index
    %c0_144 = arith.constant 0 : index
    %244 = vector.load %arg8[%c0_143, %c0_144] : memref<1x16xf32, #tpu.memory_space<vmem>>, vector<1x16xf32>
    tpu.vector_store %arg8[%c0_143, %c0_144], %243 {strides = array<i32>} : memref<1x16xf32, #tpu.memory_space<vmem>>, vector<1x16xf32>,
    %c0_145 = arith.constant 0 : index
    %245 = arith.index_cast %210 : i32 to index
    %c0_146 = arith.constant 0 : index
    %246 = vector.load %arg6[%c0_145, %245, %c0_146] : memref<1x8x16xf32, #tpu.memory_space<vmem>>, vector<1x1x16xf32>
    %247 = vector.shape_cast %246 : vector<1x1x16xf32> to vector<1x16xf32>
    %248 = vector.shape_cast %243 : vector<1x16xf32> to vector<1x1x16xf32>
    tpu.vector_store %arg6[%c0_145, %245, %c0_146], %248 {strides = array<i32>} : memref<1x8x16xf32, #tpu.memory_space<vmem>>, vector<1x1x16xf32>,
    %c5_i32 = arith.constant 5 : i32
    %c0_i32_147 = arith.constant 0 : i32
    %249 = arith.cmpi eq, %arg0, %c0_i32_147 : i32
    %c7_i32_148 = arith.constant 7 : i32
    %250 = arith.subi %c7_i32_148, %c5_i32 : i32
    %251 = arith.select %249, %c5_i32, %250 : i32
    %c1_i32_149 = arith.constant 1 : i32
    %252 = arith.muli %251, %c1_i32_149 : i32
    %c0_150 = arith.constant 0 : index
    %c0_151 = arith.constant 0 : index
    %253 = vector.load %arg8[%c0_150, %c0_151] : memref<1x16xf32, #tpu.memory_space<vmem>>, vector<1x16xf32>
    %cst_152 = arith.constant dense<0.000000e+00> : vector<1x16xf32>
    %254 = tpu.matmul %253, %28, %cst_152 {dimension_numbers = #tpu.dot_dimension_numbers<[1], [0], [0], [1], [0, 0, 1, 1], [], []>} : vector<1x16xf32>, vector<16x16xf32>, vector<1x16xf32> -> vector<1x16xf32>
    %255 = arith.addf %254, %34 : vector<1x16xf32>
    %cst_153 = arith.constant dense<0.000000e+00> : vector<1x16xf32>
    %256 = tpu.matmul %253, %30, %cst_153 {dimension_numbers = #tpu.dot_dimension_numbers<[1], [0], [0], [1], [0, 0, 1, 1], [], []>} : vector<1x16xf32>, vector<16x16xf32>, vector<1x16xf32> -> vector<1x16xf32>
    %257 = arith.addf %256, %36 : vector<1x16xf32>
    %cst_154 = arith.constant dense<0.000000e+00> : vector<1x16xf32>
    %258 = tpu.matmul %253, %32, %cst_154 {dimension_numbers = #tpu.dot_dimension_numbers<[1], [0], [0], [1], [0, 0, 1, 1], [], []>} : vector<1x16xf32>, vector<16x16xf32>, vector<1x16xf32> -> vector<1x16xf32>
    %259 = arith.addf %258, %38 : vector<1x16xf32>
    %260 = arith.index_cast %252 : i32 to index
    %c0_155 = arith.constant 0 : index
    %261 = vector.load %arg9[%260, %c0_155] : memref<8x16xf32, #tpu.memory_space<vmem>>, vector<1x16xf32>
    %262 = arith.addf %261, %255 : vector<1x16xf32>
    %263 = arith.negf %262 : vector<1x16xf32>
    %264 = math.exp %263 : vector<1x16xf32>
    %cst_156 = arith.constant 1.000000e+00 : f32
    %265 = vector.broadcast %cst_156 : f32 to vector<1x16xf32>
    %266 = arith.addf %265, %264 : vector<1x16xf32>
    %267 = arith.divf %265, %266 : vector<1x16xf32>
    %268 = arith.index_cast %252 : i32 to index
    %c0_157 = arith.constant 0 : index
    %269 = vector.load %arg10[%268, %c0_157] : memref<8x16xf32, #tpu.memory_space<vmem>>, vector<1x16xf32>
    %270 = arith.addf %269, %257 : vector<1x16xf32>
    %271 = arith.negf %270 : vector<1x16xf32>
    %272 = math.exp %271 : vector<1x16xf32>
    %cst_158 = arith.constant 1.000000e+00 : f32
    %273 = vector.broadcast %cst_158 : f32 to vector<1x16xf32>
    %274 = arith.addf %273, %272 : vector<1x16xf32>
    %275 = arith.divf %273, %274 : vector<1x16xf32>
    %276 = arith.index_cast %252 : i32 to index
    %c0_159 = arith.constant 0 : index
    %277 = vector.load %arg11[%276, %c0_159] : memref<8x16xf32, #tpu.memory_space<vmem>>, vector<1x16xf32>
    %278 = arith.mulf %267, %259 : vector<1x16xf32>
    %279 = arith.addf %277, %278 : vector<1x16xf32>
    %280 = math.tanh %279 : vector<1x16xf32>
    %cst_160 = arith.constant 1.000000e+00 : f32
    %281 = vector.broadcast %cst_160 : f32 to vector<1x16xf32>
    %282 = arith.subf %281, %275 : vector<1x16xf32>
    %283 = arith.mulf %282, %280 : vector<1x16xf32>
    %284 = arith.mulf %275, %253 : vector<1x16xf32>
    %285 = arith.addf %283, %284 : vector<1x16xf32>
    %c0_161 = arith.constant 0 : index
    %c0_162 = arith.constant 0 : index
    %286 = vector.load %arg8[%c0_161, %c0_162] : memref<1x16xf32, #tpu.memory_space<vmem>>, vector<1x16xf32>
    tpu.vector_store %arg8[%c0_161, %c0_162], %285 {strides = array<i32>} : memref<1x16xf32, #tpu.memory_space<vmem>>, vector<1x16xf32>,
    %c0_163 = arith.constant 0 : index
    %287 = arith.index_cast %252 : i32 to index
    %c0_164 = arith.constant 0 : index
    %288 = vector.load %arg6[%c0_163, %287, %c0_164] : memref<1x8x16xf32, #tpu.memory_space<vmem>>, vector<1x1x16xf32>
    %289 = vector.shape_cast %288 : vector<1x1x16xf32> to vector<1x16xf32>
    %290 = vector.shape_cast %285 : vector<1x16xf32> to vector<1x1x16xf32>
    tpu.vector_store %arg6[%c0_163, %287, %c0_164], %290 {strides = array<i32>} : memref<1x8x16xf32, #tpu.memory_space<vmem>>, vector<1x1x16xf32>,
    %c6_i32 = arith.constant 6 : i32
    %c0_i32_165 = arith.constant 0 : i32
    %291 = arith.cmpi eq, %arg0, %c0_i32_165 : i32
    %c7_i32_166 = arith.constant 7 : i32
    %292 = arith.subi %c7_i32_166, %c6_i32 : i32
    %293 = arith.select %291, %c6_i32, %292 : i32
    %c1_i32_167 = arith.constant 1 : i32
    %294 = arith.muli %293, %c1_i32_167 : i32
    %c0_168 = arith.constant 0 : index
    %c0_169 = arith.constant 0 : index
    %295 = vector.load %arg8[%c0_168, %c0_169] : memref<1x16xf32, #tpu.memory_space<vmem>>, vector<1x16xf32>
    %cst_170 = arith.constant dense<0.000000e+00> : vector<1x16xf32>
    %296 = tpu.matmul %295, %28, %cst_170 {dimension_numbers = #tpu.dot_dimension_numbers<[1], [0], [0], [1], [0, 0, 1, 1], [], []>} : vector<1x16xf32>, vector<16x16xf32>, vector<1x16xf32> -> vector<1x16xf32>
    %297 = arith.addf %296, %34 : vector<1x16xf32>
    %cst_171 = arith.constant dense<0.000000e+00> : vector<1x16xf32>
    %298 = tpu.matmul %295, %30, %cst_171 {dimension_numbers = #tpu.dot_dimension_numbers<[1], [0], [0], [1], [0, 0, 1, 1], [], []>} : vector<1x16xf32>, vector<16x16xf32>, vector<1x16xf32> -> vector<1x16xf32>
    %299 = arith.addf %298, %36 : vector<1x16xf32>
    %cst_172 = arith.constant dense<0.000000e+00> : vector<1x16xf32>
    %300 = tpu.matmul %295, %32, %cst_172 {dimension_numbers = #tpu.dot_dimension_numbers<[1], [0], [0], [1], [0, 0, 1, 1], [], []>} : vector<1x16xf32>, vector<16x16xf32>, vector<1x16xf32> -> vector<1x16xf32>
    %301 = arith.addf %300, %38 : vector<1x16xf32>
    %302 = arith.index_cast %294 : i32 to index
    %c0_173 = arith.constant 0 : index
    %303 = vector.load %arg9[%302, %c0_173] : memref<8x16xf32, #tpu.memory_space<vmem>>, vector<1x16xf32>
    %304 = arith.addf %303, %297 : vector<1x16xf32>
    %305 = arith.negf %304 : vector<1x16xf32>
    %306 = math.exp %305 : vector<1x16xf32>
    %cst_174 = arith.constant 1.000000e+00 : f32
    %307 = vector.broadcast %cst_174 : f32 to vector<1x16xf32>
    %308 = arith.addf %307, %306 : vector<1x16xf32>
    %309 = arith.divf %307, %308 : vector<1x16xf32>
    %310 = arith.index_cast %294 : i32 to index
    %c0_175 = arith.constant 0 : index
    %311 = vector.load %arg10[%310, %c0_175] : memref<8x16xf32, #tpu.memory_space<vmem>>, vector<1x16xf32>
    %312 = arith.addf %311, %299 : vector<1x16xf32>
    %313 = arith.negf %312 : vector<1x16xf32>
    %314 = math.exp %313 : vector<1x16xf32>
    %cst_176 = arith.constant 1.000000e+00 : f32
    %315 = vector.broadcast %cst_176 : f32 to vector<1x16xf32>
    %316 = arith.addf %315, %314 : vector<1x16xf32>
    %317 = arith.divf %315, %316 : vector<1x16xf32>
    %318 = arith.index_cast %294 : i32 to index
    %c0_177 = arith.constant 0 : index
    %319 = vector.load %arg11[%318, %c0_177] : memref<8x16xf32, #tpu.memory_space<vmem>>, vector<1x16xf32>
    %320 = arith.mulf %309, %301 : vector<1x16xf32>
    %321 = arith.addf %319, %320 : vector<1x16xf32>
    %322 = math.tanh %321 : vector<1x16xf32>
    %cst_178 = arith.constant 1.000000e+00 : f32
    %323 = vector.broadcast %cst_178 : f32 to vector<1x16xf32>
    %324 = arith.subf %323, %317 : vector<1x16xf32>
    %325 = arith.mulf %324, %322 : vector<1x16xf32>
    %326 = arith.mulf %317, %295 : vector<1x16xf32>
    %327 = arith.addf %325, %326 : vector<1x16xf32>
    %c0_179 = arith.constant 0 : index
    %c0_180 = arith.constant 0 : index
    %328 = vector.load %arg8[%c0_179, %c0_180] : memref<1x16xf32, #tpu.memory_space<vmem>>, vector<1x16xf32>
    tpu.vector_store %arg8[%c0_179, %c0_180], %327 {strides = array<i32>} : memref<1x16xf32, #tpu.memory_space<vmem>>, vector<1x16xf32>,
    %c0_181 = arith.constant 0 : index
    %329 = arith.index_cast %294 : i32 to index
    %c0_182 = arith.constant 0 : index
    %330 = vector.load %arg6[%c0_181, %329, %c0_182] : memref<1x8x16xf32, #tpu.memory_space<vmem>>, vector<1x1x16xf32>
    %331 = vector.shape_cast %330 : vector<1x1x16xf32> to vector<1x16xf32>
    %332 = vector.shape_cast %327 : vector<1x16xf32> to vector<1x1x16xf32>
    tpu.vector_store %arg6[%c0_181, %329, %c0_182], %332 {strides = array<i32>} : memref<1x8x16xf32, #tpu.memory_space<vmem>>, vector<1x1x16xf32>,
    %c7_i32_183 = arith.constant 7 : i32
    %c0_i32_184 = arith.constant 0 : i32
    %333 = arith.cmpi eq, %arg0, %c0_i32_184 : i32
    %c7_i32_185 = arith.constant 7 : i32
    %334 = arith.subi %c7_i32_185, %c7_i32_183 : i32
    %335 = arith.select %333, %c7_i32_183, %334 : i32
    %c1_i32_186 = arith.constant 1 : i32
    %336 = arith.muli %335, %c1_i32_186 : i32
    %c0_187 = arith.constant 0 : index
    %c0_188 = arith.constant 0 : index
    %337 = vector.load %arg8[%c0_187, %c0_188] : memref<1x16xf32, #tpu.memory_space<vmem>>, vector<1x16xf32>
    %cst_189 = arith.constant dense<0.000000e+00> : vector<1x16xf32>
    %338 = tpu.matmul %337, %28, %cst_189 {dimension_numbers = #tpu.dot_dimension_numbers<[1], [0], [0], [1], [0, 0, 1, 1], [], []>} : vector<1x16xf32>, vector<16x16xf32>, vector<1x16xf32> -> vector<1x16xf32>
    %339 = arith.addf %338, %34 : vector<1x16xf32>
    %cst_190 = arith.constant dense<0.000000e+00> : vector<1x16xf32>
    %340 = tpu.matmul %337, %30, %cst_190 {dimension_numbers = #tpu.dot_dimension_numbers<[1], [0], [0], [1], [0, 0, 1, 1], [], []>} : vector<1x16xf32>, vector<16x16xf32>, vector<1x16xf32> -> vector<1x16xf32>
    %341 = arith.addf %340, %36 : vector<1x16xf32>
    %cst_191 = arith.constant dense<0.000000e+00> : vector<1x16xf32>
    %342 = tpu.matmul %337, %32, %cst_191 {dimension_numbers = #tpu.dot_dimension_numbers<[1], [0], [0], [1], [0, 0, 1, 1], [], []>} : vector<1x16xf32>, vector<16x16xf32>, vector<1x16xf32> -> vector<1x16xf32>
    %343 = arith.addf %342, %38 : vector<1x16xf32>
    %344 = arith.index_cast %336 : i32 to index
    %c0_192 = arith.constant 0 : index
    %345 = vector.load %arg9[%344, %c0_192] : memref<8x16xf32, #tpu.memory_space<vmem>>, vector<1x16xf32>
    %346 = arith.addf %345, %339 : vector<1x16xf32>
    %347 = arith.negf %346 : vector<1x16xf32>
    %348 = math.exp %347 : vector<1x16xf32>
    %cst_193 = arith.constant 1.000000e+00 : f32
    %349 = vector.broadcast %cst_193 : f32 to vector<1x16xf32>
    %350 = arith.addf %349, %348 : vector<1x16xf32>
    %351 = arith.divf %349, %350 : vector<1x16xf32>
    %352 = arith.index_cast %336 : i32 to index
    %c0_194 = arith.constant 0 : index
    %353 = vector.load %arg10[%352, %c0_194] : memref<8x16xf32, #tpu.memory_space<vmem>>, vector<1x16xf32>
    %354 = arith.addf %353, %341 : vector<1x16xf32>
    %355 = arith.negf %354 : vector<1x16xf32>
    %356 = math.exp %355 : vector<1x16xf32>
    %cst_195 = arith.constant 1.000000e+00 : f32
    %357 = vector.broadcast %cst_195 : f32 to vector<1x16xf32>
    %358 = arith.addf %357, %356 : vector<1x16xf32>
    %359 = arith.divf %357, %358 : vector<1x16xf32>
    %360 = arith.index_cast %336 : i32 to index
    %c0_196 = arith.constant 0 : index
    %361 = vector.load %arg11[%360, %c0_196] : memref<8x16xf32, #tpu.memory_space<vmem>>, vector<1x16xf32>
    %362 = arith.mulf %351, %343 : vector<1x16xf32>
    %363 = arith.addf %361, %362 : vector<1x16xf32>
    %364 = math.tanh %363 : vector<1x16xf32>
    %cst_197 = arith.constant 1.000000e+00 : f32
    %365 = vector.broadcast %cst_197 : f32 to vector<1x16xf32>
    %366 = arith.subf %365, %359 : vector<1x16xf32>
    %367 = arith.mulf %366, %364 : vector<1x16xf32>
    %368 = arith.mulf %359, %337 : vector<1x16xf32>
    %369 = arith.addf %367, %368 : vector<1x16xf32>
    %c0_198 = arith.constant 0 : index
    %c0_199 = arith.constant 0 : index
    %370 = vector.load %arg8[%c0_198, %c0_199] : memref<1x16xf32, #tpu.memory_space<vmem>>, vector<1x16xf32>
    tpu.vector_store %arg8[%c0_198, %c0_199], %369 {strides = array<i32>} : memref<1x16xf32, #tpu.memory_space<vmem>>, vector<1x16xf32>,
    %c0_200 = arith.constant 0 : index
    %371 = arith.index_cast %336 : i32 to index
    %c0_201 = arith.constant 0 : index
    %372 = vector.load %arg6[%c0_200, %371, %c0_201] : memref<1x8x16xf32, #tpu.memory_space<vmem>>, vector<1x1x16xf32>
    %373 = vector.shape_cast %372 : vector<1x1x16xf32> to vector<1x16xf32>
    %374 = vector.shape_cast %369 : vector<1x16xf32> to vector<1x1x16xf32>
    tpu.vector_store %arg6[%c0_200, %371, %c0_201], %374 {strides = array<i32>} : memref<1x8x16xf32, #tpu.memory_space<vmem>>, vector<1x1x16xf32>,
    %c8_i32 = arith.constant 8 : i32
    %c0_202 = arith.constant 0 : index
    %c0_203 = arith.constant 0 : index
    %375 = vector.load %arg8[%c0_202, %c0_203] : memref<1x16xf32, #tpu.memory_space<vmem>>, vector<1x16xf32>
    %c0_204 = arith.constant 0 : index
    %c0_205 = arith.constant 0 : index
    %c0_206 = arith.constant 0 : index
    %376 = vector.load %arg7[%c0_204, %c0_205, %c0_206] : memref<1x1x16xf32, #tpu.memory_space<vmem>>, vector<1x1x16xf32>
    %377 = vector.shape_cast %376 : vector<1x1x16xf32> to vector<1x16xf32>
    %378 = vector.shape_cast %375 : vector<1x16xf32> to vector<1x1x16xf32>
    tpu.vector_store %arg7[%c0_204, %c0_205, %c0_206], %378 {strides = array<i32>} : memref<1x1x16xf32, #tpu.memory_space<vmem>>, vector<1x1x16xf32>,
    return
  }
  func.func @transform_0(%arg0: i32) -> (i32, i32) {
    %c0_i32 = arith.constant 0 : i32
    %c0_i32_0 = arith.constant 0 : i32
    %c0_i32_1 = arith.constant 0 : i32
    return %c0_i32, %c0_i32_0 : i32, i32
  }
  func.func @transform_1(%arg0: i32) -> (i32, i32, i32, i32) {
    %c0_i32 = arith.constant 0 : i32
    %c0_i32_0 = arith.constant 0 : i32
    %c0_i32_1 = arith.constant 0 : i32
    %c0_i32_2 = arith.constant 0 : i32
    return %arg0, %c0_i32, %c0_i32_0, %c0_i32_1 : i32, i32, i32, i32
  }
  func.func @transform_2(%arg0: i32) -> (i32, i32, i32, i32) {
    %c0_i32 = arith.constant 0 : i32
    %c0_i32_0 = arith.constant 0 : i32
    %c0_i32_1 = arith.constant 0 : i32
    %c0_i32_2 = arith.constant 0 : i32
    return %arg0, %c0_i32, %c0_i32_0, %c0_i32_1 : i32, i32, i32, i32
  }
  func.func @transform_3(%arg0: i32) -> (i32, i32, i32, i32) {
    %c0_i32 = arith.constant 0 : i32
    %c0_i32_0 = arith.constant 0 : i32
    %c0_i32_1 = arith.constant 0 : i32
    %c0_i32_2 = arith.constant 0 : i32
    return %arg0, %c0_i32, %c0_i32_0, %c0_i32_1 : i32, i32, i32, i32
  }
  func.func @transform_4(%arg0: i32) -> (i32, i32, i32, i32) {
    %c0_i32 = arith.constant 0 : i32
    %c0_i32_0 = arith.constant 0 : i32
    %c0_i32_1 = arith.constant 0 : i32
    %c0_i32_2 = arith.constant 0 : i32
    return %arg0, %c0_i32, %c0_i32_0, %c0_i32_1 : i32, i32, i32, i32
  }
  func.func @transform_5(%arg0: i32) -> (i32, i32, i32) {
    %c0_i32 = arith.constant 0 : i32
    %c0_i32_0 = arith.constant 0 : i32
    %c0_i32_1 = arith.constant 0 : i32
    return %arg0, %c0_i32, %c0_i32_0 : i32, i32, i32
  }
  func.func @transform_6(%arg0: i32) -> (i32, i32, i32) {
    %c0_i32 = arith.constant 0 : i32
    %c0_i32_0 = arith.constant 0 : i32
    %c0_i32_1 = arith.constant 0 : i32
    return %arg0, %c0_i32, %c0_i32_0 : i32, i32, i32
  }
}

</mosaic_0001>

<bundles_post_ra>
// kernel: tpu_custom_call.1
= control target key start
LH: loop header
LB: loop body
LE: loop exit
PB: predicated region body
PF: predicated region fallthrough
CT: control target
= control target key end

     0   :  { %s4191_s0 = inlined_call_operand.hbm [shape: f32[8,16], index: 0, kind: input, shape index: {}]   ;;  %s4192_s1 = inlined_call_operand.hbm [shape: f32[2,3,16,16], index: 1, kind: input, shape index: {}]   ;;  %s4193_s2 = inlined_call_operand.hbm [shape: f32[2,3,16,16], index: 2, kind: input, shape index: {}]   ;;  %s4194_s3 = inlined_call_operand.vmem [shape: f32[2,3,1,16], index: 3, kind: input, shape index: {}]   ;;  %s4195_s4 = inlined_call_operand.vmem [shape: f32[2,3,1,16], index: 4, kind: input, shape index: {}]   ;;  %s4196_s5 = inlined_call_operand.hbm [shape: f32[2,8,16], index: 5, kind: output, shape index: {0}]   ;;  %s4197_s6 = inlined_call_operand.hbm [shape: f32[2,1,16], index: 6, kind: output, shape index: {1}]  }
   0x1   :  { %4204 = sst [smem:[#allocation19_spill]] %s4192_s1 }
   0x2   :  { %4205 = sst [smem:[#allocation20_spill]] %s4193_s2 }
   0x3   :  { %12 = vsyncpa [#allocation7], 0 }
   0x4   :  { %13 = vsyncpa [#allocation10], 0 }
   0x5   :  { %15 = vsyncpa [#allocation10 + $0x1], 0 }
   0x6   :  { %16 = vsyncpa [#allocation8], 0 }
   0x7   :  { %18 = vsyncpa [#allocation8 + $0x1], 0 }
   0x8   :  { %19 = vsyncpa [#allocation14], 0 }
   0x9   :  { %21 = vsyncpa [#allocation14 + $0x1], 0  ;;  %s3626_s21 = smov 0   ;;  %s3628_s22 = smov 0  }
   0xa   :  { %s3630_s23 = smov 0   ;;  %s3632_s24 = smov 0  }
   0xb LB: > { %s3647_s25 = sadd.s32 1, %s3579_s24   ;;  %s55_s26 = sadd.s32 1, %s3575_s23  ;;  %s3579_s24 = sphi %s3632_s24, %s4234_s24   ;;  %s3575_s23 = sphi %s3630_s23, %s4233_s23   ;;  %s3571_s22 = sphi %s3628_s22, %s4232_s22   ;;  %s3567_s21 = sphi %s3626_s21, %s4231_s21  }
   0xc   : > { %s52_s27 = ssub.s32 %s3579_s24, %s3647_s25  ;;  %p62_p0 = scmp.ne.s32.totalorder %s3575_s23, %s3571_s22 }
   0xd   : > { %p53_p1 = scmp.eq.s32.totalorder %s52_s27, 0  ;;  %p63_p2 = scmp.eq.s32.totalorder %s3579_s24, 0 }
   0xe   : > { %p3268_p4 = scmp.lt.s32.totalorder %s3579_s24, 2  ;;  %s233_s29 = sand.u32 1, %s3579_s24  }
   0xf   : > { %s3658_s28 = scalar_select %p53_p1, %s3575_s23, %s55_s26  }
  0x10   : > { %p64_p5 = por %p63_p2, %p62_p0  ;;  %s235_s30 = sand.u32 1, %s3575_s23  }
  0x11   : > { %s3665_s7 = smul.u32 48, %s235_s30  ;;  %s4207_s1 = sld [smem:[#allocation19_spill]] }
  0x12   : > { %p3667_p6 = pnand %p3268_p4, %p64_p5  ;;  %s3232_s9 = smul.u32 768, %s3579_s24 }
  0x13   : > { %s237_s13 = scalar_lea.vmem [#allocation9], %s3665_s7  ;;  %s3682_s15 = scalar_lea.sflag [#allocation10], %s233_s29 }
  0x14   : > { %s244_s14 = sshll.u32 %s237_s13, 4  ;;  %p3391_p8 = pneg %p3667_p6  ;;  %s3680_s14 = int_to_ptr.vmem [resolvable:$true] %s244_s14 }
  0x17   : > { %s3677_s12 = scalar_lea.hbm %s4207_s1, %s3232_s9  ;;  %s3394_s19 = scalar_lea.hbm %s4207_s1, 1536 }
  0x18   : > { %s3389_s16 = scalar_lea.hbm %s3677_s12, 768  ;;  %p3395_p11 = scmp.lt.u32.totalorder %s3677_s12, %s4207_s1 }
  0x19   : > { %p3390_p7 = scmp.ne.s32.totalorder %s3677_s12, %s3389_s16  ;;  %p3396_p12 = scmp.lt.u32.totalorder %s3394_s19, %s3389_s16 }
  0x1a   : > { %p3398_p1 = scmp.lt.u32.totalorder %s3389_s16, %s3677_s12 }
  0x1b   : > { %p3392_p9 = pnand %p3391_p8, %p3390_p7  ;;  %p3397_p13 = por %p3396_p12, %p3395_p11 }
  0x1d   : > { %p3393_p10 = pneg %p3392_p9  ;;  %p3399_p2 = por %p3398_p1, %p3397_p13 }
  0x1f   : > { %p3400_p4 = pnand %p3399_p2, %p3393_p10 }
  0x21   : > { %3403 = shalt.err (!%p3400_p4)
}
  0x22   : > { %s3404_s27 = scalar_lea.vmem %s3680_s14, 768  ;;  %s3581_s29 = smov [#allocation9]  }
  0x23   : > { %p3405_p5 = scmp.ne.s32.totalorder %s3680_s14, %s3404_s27  ;;  %s3409_s30 = sshll.u32 %s3581_s29, 4  ;;  %s3410_s30 = int_to_ptr.vmem [resolvable:$false] %s3409_s30 }
  0x24   : > { %s3411_s10 = scalar_lea.vmem %s3410_s30, 1536  ;;  %p3412_p3 = scmp.lt.s32.totalorder %s3680_s14, %s3410_s30 }
  0x25   : > { %p3407_p7 = pnand %p3405_p5, %p3391_p8  ;;  %p3413_p11 = scmp.lt.s32.totalorder %s3411_s10, %s3404_s27 }
  0x27   : > { %p3408_p9 = pneg %p3407_p7  ;;  %p3414_p12 = por %p3413_p11, %p3412_p3 }
  0x29   : > { %p3415_p13 = pnand %p3414_p12, %p3408_p9 }
  0x2b   : > { %3418 = shalt.err (!%p3415_p13)
}
  0x2c   : > { %s4198_s11 = smov 128   ;;  %s4201_s13 = smov 8  }
  0x2d   : > { %3256 = dma.hbm_to_vmem [thread:$0]  (!%p3667_p6), %s3677_s12, 768, %s3680_s14, %s3682_s15, %s4198_s11, %s4198_s11, %s4201_s13  }
  0x2e   : > { %s3714_s16 = sadd.s32 4294967295, %s3579_s24   ;;  %s2808_s17 = sadd.s32 4294967294, %s3579_s24  }
  0x2f   : > { %p68_p3 = scmp.ne.s32.totalorder %s3571_s22, %s3567_s21  ;;  %p4199_p10 = scmp.eq.s32.totalorder %s3714_s16, 0 }
  0x30   : > { %p170_p1 = scmp.eq.s32.totalorder %s3714_s16, 1  ;;  %p176_p2 = scmp.eq.s32.totalorder %s2808_s17, 1 }
  0x31   : > { %p3723_p4 = por %p4199_p10, %p68_p3  ;;  %p2809_p5 = scmp.ge.s32.totalorder %s3579_s24, 1 }
  0x32   : > { %p3731_p7 = por %p170_p1, %p62_p0  ;;  %p3735_p9 = por %p176_p2, %p68_p3 }
  0x33   : > { %s4208_s18 = scalar_select %p3723_p4, 1, 0 }
  0x34   : > { %s4209_s12 = scalar_select %p3731_p7, 1, 0 }
  0x35   : > { %s4210_s14 = scalar_select %p3735_p9, 1, 0 }
  0x36   : > { %p209_p11 = scmp.lt.s32.totalorder %s3579_s24, 3  ;;  %s3584_s20 = smov [#allocation6]  }
  0x37   : > { %s222_s26 = sshll.u32 %s3584_s20, 4  ;;  %s4212_s2 = sld [smem:[#allocation20_spill]]  ;;  %s3756_s26 = int_to_ptr.vmem [resolvable:$true] %s222_s26 }
  0x38   : > { %p3740_p12 = pnand %p2809_p5, %p209_p11  ;;  %s258_s10 = scalar_lea.vmem [#allocation11], %s3665_s7 }
  0x39   : > { %s265_s17 = sshll.u32 %s258_s10, 4  ;;  %s3754_s17 = int_to_ptr.vmem [resolvable:$true] %s265_s17 }
  0x3a   : > { %s4211_s19 = scalar_select %p3740_p12, 1, 0 }
  0x3b   : > { %p3249_p0 = pneg %p3740_p12 }
  0x3d   : > { %s3749_s30 = scalar_lea.hbm %s4212_s2, %s3232_s9  ;;  %p3760_p13 = pnand %p3249_p0, %p4199_p10 }
  0x3e   : > { %s3419_s27 = scalar_lea.hbm %s3749_s30, 768  ;;  %s3424_s7 = scalar_lea.hbm %s4212_s2, 1536 }
  0x3f   : > { %p3420_p3 = scmp.ne.s32.totalorder %s3749_s30, %s3419_s27  ;;  %p3425_p5 = scmp.lt.u32.totalorder %s3749_s30, %s4212_s2 }
  0x40   : > { %p3426_p11 = scmp.lt.u32.totalorder %s3424_s7, %s3419_s27  ;;  %p3428_p0 = scmp.lt.u32.totalorder %s3419_s27, %s3749_s30 }
  0x41   : > { %p3422_p1 = pnand %p3420_p3, %p3391_p8 }
  0x42   : > { %p3427_p9 = por %p3426_p11, %p3425_p5 }
  0x43   : > { %p3423_p2 = pneg %p3422_p1 }
  0x44   : > { %p3429_p10 = por %p3428_p0, %p3427_p9 }
  0x46   : > { %p3430_p7 = pnand %p3429_p10, %p3423_p2 }
  0x48   : > { %3433 = shalt.err (!%p3430_p7)
}
  0x49   : > { %s3434_s13 = scalar_lea.vmem %s3754_s17, 768  ;;  %s3585_s9 = smov [#allocation11]  }
  0x4a   : > { %p3435_p3 = scmp.ne.s32.totalorder %s3754_s17, %s3434_s13  ;;  %s3439_s29 = sshll.u32 %s3585_s9, 4  ;;  %s3440_s29 = int_to_ptr.vmem [resolvable:$false] %s3439_s29 }
  0x4b   : > { %s3441_s11 = scalar_lea.vmem %s3440_s29, 1536  ;;  %p3442_p12 = scmp.lt.s32.totalorder %s3754_s17, %s3440_s29 }
  0x4c   : > { %p3437_p1 = pnand %p3435_p3, %p3391_p8  ;;  %p3443_p5 = scmp.lt.s32.totalorder %s3441_s11, %s3434_s13 }
  0x4e   : > { %p3438_p4 = pneg %p3437_p1  ;;  %p3444_p11 = por %p3443_p5, %p3442_p12 }
  0x50   : > { %p3445_p9 = pnand %p3444_p11, %p3438_p4 }
  0x52   : > { %3448 = shalt.err (!%p3445_p9)
}
  0x53   : > { %s4214_s27 = smov 8   ;;  %s4215_s7 = smov 128  }
  0x54   : > { %3259 = dma.hbm_to_vmem [thread:$0]  (!%p3667_p6), %s3749_s30, 768, %s3754_s17, %s3682_s15, %s4215_s7, %s4215_s7, %s4214_s27  }
  0x55   : > { %s3449_s9 = scalar_lea.hbm %s4191_s0, 128  ;;  %p3451_p10 = pneg %p3760_p13 }
  0x56   : > { %p3450_p8 = scmp.ne.s32.totalorder %s4191_s0, %s3449_s9  ;;  %p3456_p12 = scmp.lt.u32.totalorder %s3449_s9, %s4191_s0 }
  0x58   : > { %p3452_p4 = pnand %p3451_p10, %p3450_p8 }
  0x5a   : > { %p3453_p7 = pneg %p3452_p4 }
  0x5c   : > { %p3458_p2 = pnand %p3456_p12, %p3453_p7 }
  0x5e   : > { %3461 = shalt.err (!%p3458_p2)
}
  0x5f   : > { %s3462_s15 = scalar_lea.vmem %s3756_s26, 128  ;;  %p3470_p1 = scmp.lt.s32.totalorder %s3756_s26, %s3756_s26 }
  0x60   : > { %p3463_p6 = scmp.ne.s32.totalorder %s3756_s26, %s3462_s15  ;;  %p3471_p5 = scmp.lt.s32.totalorder %s3462_s15, %s3462_s15 }
  0x62   : > { %p3465_p0 = pnand %p3463_p6, %p3451_p10  ;;  %p3472_p11 = por %p3471_p5, %p3470_p1 }
  0x64   : > { %p3466_p3 = pneg %p3465_p0 }
  0x66   : > { %p3473_p9 = pnand %p3472_p11, %p3466_p3 }
  0x68   : > { %3476 = shalt.err (!%p3473_p9)
}
  0x69   : > { %3252 = dma.hbm_to_vmem [thread:$0]  (!%p3760_p13), %s4191_s0, 128, %s3756_s26, [#allocation7]  }
  0x6a   : > { %p4216_p8 = scmp.ne.s32.totalorder %s4211_s19, 0 }
  0x6b   : > { %p4217_p4 = scmp.eq.s32.totalorder (!%p4216_p8), %s3714_s16, 0 }
  0x6c   : > { %291 = sbr.rel (%p4216_p8) target bundleno = 2319 (0x90f), region = 40 }
  0x73   : > { %3550 = dma.done.wait (%p4217_p4), [#allocation7], 128   ;;  %p4218_p10 = pmov %p4217_p4 }
  0x74   : > { %s297_s30 = sand.u32 1, %s3714_s16   ;;  %s3820_s17 = sand.u32 1, %s3571_s22  }
  0x75   : > { %3552 = vsyncadd (%p4218_p10), [#allocation7], 4294967168  ;;  %s3235_s20 = smul.u32 48, %s3820_s17  ;;  %s298_s11 = scalar_lea.sflag [#allocation10], %s297_s30 }
  0x76   : > { %p4219_p13 = scmp.ne.s32.totalorder %s4208_s18, 0 }
  0x77   : > { %s301_s27 = scalar_lea.vmem [#allocation9], %s3235_s20 }
  0x78   : > { %3554 = dma.done.wait (%p4219_p13), %s298_s11, 1536  }
  0x79   : > { %3556 = vsyncadd (%p4219_p13), %s298_s11, 4294965760  ;;  %v3586_v0 = vmov 0.0|0.0   ;;  %vm3587_vm0 = vmmov 0   ;;  %v3588_v1 = vmov 0.0   ;;  %vm613_vm1 = vcmask 122880   ;;  %v365_v2 = vld [vmem:[%s301_s27] sm:$0xff]  ;;  %p4220_p12 = pmov %p4217_p4  ;;  %p4221_p2 = pmov %p4217_p4 }
  0x7a   : > { %3150 = vmatprep.subr.bf16.mxu0 %v3586_v0  ;;  %2965 = vmatprep.mubr.msk.f32.mxu0 %vm3587_vm0, %v3588_v1  ;;  %614 = vst.msk [vmem:[#allocation2] sm:$0x1] %vm613_vm1, %v3588_v1  ;;  %v366_v3 = vld [vmem:[%s301_s27 + $0x8] sm:$0xff]  ;;  %v2819_v5 = vld [vmem:[%s301_s27 + $0x10] sm:$0xff]  ;;  %v2820_v6 = vld [vmem:[%s301_s27 + $0x18] sm:$0xff]  ;;  %s310_s18 = scalar_lea.vmem [#allocation11], %s3235_s20 }
  0x7b   : > { %3153 = vmatprep.subr.bf16.mxu1 %v3586_v0  ;;  %2972 = vmatprep.mubr.msk.f32.mxu1 %vm3587_vm0, %v3588_v1  ;;  %v3151_v4 = vpack.c.bf16 %v366_v3, %v365_v2  ;;  %v615_v7 = vld [vmem:[%s310_s18] sm:$0xff]  ;;  %v3154_v8 = vpack.c.bf16 %v2820_v6, %v2819_v5  ;;  %v616_v9 = vld [vmem:[%s310_s18 + $0x8] sm:$0xff]  ;;  %vm374_vm2 = vcmask 130048   ;;  %v2829_v15 = vld [vmem:[%s310_s18 + $0x10] sm:$0xff]  ;;  %p356_p7 = scmp.lt.s32.totalorder %s3714_s16, 1  ;;  %s2816_s20 = sshll.u32 %s3820_s17, 3 }
  0x7c   : > { %v2824_v10 = vld [vmem:[%s301_s27 + $0x20] sm:$0xff]  ;;  %v2825_v11 = vld [vmem:[%s301_s27 + $0x28] sm:$0xff]  ;;  %v3836_v14 = vpack.c.bf16 %v616_v9, %v615_v7  ;;  %v2830_v16 = vld [vmem:[%s310_s18 + $0x18] sm:$0xff]  ;;  %s3890_s15 = scalar_select %p4220_p12, 0, 7 }
  0x7d   : > { %3152 = vmatpush3.bf16.msra.mxu0 %v3151_v4  ;;  %v364_v12 = vld [vmem:[#allocation6] sm:$0xff]  ;;  %v3157_v13 = vpack.c.bf16 %v2825_v11, %v2824_v10  ;;  %3155 = vmatpush3.bf16.msra.mxu1 %v3154_v8  ;;  %v2831_v17 = vld [vmem:[%s310_s18 + $0x20] sm:$0xff]  ;;  %v3841_v19 = vpack.c.bf16 %v2830_v16, %v2829_v15  ;;  %s357_s19 = scalar_select %p356_p7, %s3714_s16, 1 }
  0x7e   : > { %3156 = vmatprep.subr.bf16.mxu0 %v3586_v0  ;;  %3159 = vmatprep.subr.bf16.mxu1 %v3586_v0  ;;  %v2832_v18 = vld [vmem:[%s310_s18 + $0x28] sm:$0xff]  ;;  %s844_s1 = scalar_lea.vmem [#allocation3], %s3890_s15  ;;  %s853_s2 = scalar_lea.vmem [#allocation4], %s3890_s15 }
  0x7f   : > { %v3848_v21 = vpack.c.bf16 %v2832_v18, %v2831_v17  ;;  %s3236_s26 = smul.u32 3, %s357_s19  ;;  %s862_s30 = scalar_lea.vmem [#allocation5], %s3890_s15 }
  0x80   : > { %2966 = vmatmul.mubr.msk.f32.vlgmr.msra.gmra.mrb[0].mxu0 %vm374_vm2, %v364_v12  ;;  %2973 = vmatmul.mubr.msk.f32.vlgmr.msra.gmra.mrb[0].mxu1 %vm374_vm2, %v364_v12  ;;  %s3911_s11 = scalar_lea.vmem [#allocation12], %s2816_s20  ;;  %p4222_p6 = pmov %p4221_p2 }
  0x81   : > { %3158 = vmatpush3.bf16.msra.mxu0 %v3157_v13  ;;  %3161 = vmatpush3.bf16.msra.mxu1 %v3836_v14  ;;  %v3846_v20 = vld [vmem:[#allocation2] sm:$0x1]  ;;  %s359_s9 = scalar_lea.vmem %s4194_s3, %s3236_s26  ;;  %s3885_s13 = scalar_lea.vmem %s4195_s4, %s3236_s26 }
  0x82   : > { %2986 = vmatprep.mubr.msk.f32.mxu1 %vm3587_vm0, %v3588_v1  ;;  %2979 = vmatprep.mubr.msk.f32.mxu0 %vm3587_vm0, %v3588_v1  ;;  %v2817_v22 = vld [vmem:[%s359_s9] ss:$0 sm:$0xff]  ;;  %v2822_v23 = vld [vmem:[%s359_s9 + $0x1] ss:$0 sm:$0xff]  ;;  %v2827_v30 = vld [vmem:[%s359_s9 + $0x2] ss:$0 sm:$0xff]  ;;  %s872_s27 = scalar_lea.vmem %s3911_s11, %s3890_s15 [#allocation12]  ;;  %p4223_p0 = pmov %p4221_p2 }
  0x83   : > { %3162 = vmatprep.subr.bf16.mxu0 %v3586_v0  ;;  %3165 = vmatprep.subr.bf16.mxu1 %v3586_v0  ;;  %v3893_v31 = vld [vmem:[%s3885_s13] sm:$0x1]  ;;  %v3897_v37 = vld [vmem:[%s3885_s13 + $0x1] sm:$0x1]  ;;  %v3905_v53 = vld [vmem:[%s3885_s13 + $0x2] sm:$0x1] }
  0x84   : > { %2980 = vmatmul.mubr.msk.f32.vlgmr.msra.gmra.mrb[2].mxu0 %vm374_vm2, %v364_v12  ;;  %2987 = vmatmul.mubr.msk.f32.vlgmr.msra.gmra.mrb[2].mxu1 %vm374_vm2, %v3846_v20  ;;  %s3934_s18 = scalar_select %p4221_p2, 1, 6 }
  0x85   : > { %3164 = vmatpush3.bf16.msra.mxu0 %v3841_v19  ;;  %2993 = vmatprep.mubr.msk.f32.mxu0 %vm3587_vm0, %v3588_v1  ;;  %s3963_s9 = scalar_select %p4222_p6, 2, 5 }
  0x86   : > { %3167 = vmatpush3.bf16.msra.mxu1 %v3848_v21  ;;  %3000 = vmatprep.mubr.msk.f32.mxu1 %vm3587_vm0, %v3588_v1  ;;  %s1089_s19 = scalar_lea.vmem [#allocation3], %s3934_s18  ;;  %s1098_s26 = scalar_lea.vmem [#allocation4], %s3934_s18 }
  0x87   : > { %3168 = vmatprep.subr.bf16.mxu0 %v3586_v0  ;;  %3171 = vmatprep.subr.bf16.mxu1 %v3586_v0  ;;  %s1107_s7 = scalar_lea.vmem [#allocation5], %s3934_s18  ;;  %s1117_s10 = scalar_lea.vmem %s3911_s11, %s3934_s18 [#allocation12] }
  0x88   : > { %2994 = vmatmul.mubr.msk.f32.vlgmr.msra.gmra.mrb[4].mxu0 %vm374_vm2, %v3846_v20  ;;  %s1334_s29 = scalar_lea.vmem [#allocation3], %s3963_s9  ;;  %s1343_s8 = scalar_lea.vmem [#allocation4], %s3963_s9 }
  0x89   : > { %3001 = vmatmul.mubr.msk.f32.vlgmr.msra.gmra.mrb[4].mxu1 %vm374_vm2, %v3846_v20  ;;  %3170 = vmatpush3.bf16.msra.mxu0 %v3836_v14  ;;  %s1352_s13 = scalar_lea.vmem [#allocation5], %s3963_s9  ;;  %s1362_s15 = scalar_lea.vmem %s3911_s11, %s3963_s9 [#allocation12] }
  0x8a   : > { %3173 = vmatpush3.bf16.msra.mxu1 %v3841_v19  ;;  %3007 = vmatprep.mubr.msk.f32.mxu0 %vm3587_vm0, %v3588_v1  ;;  %p4224_p3 = pmov %p4223_p0  ;;  %p4225_p1 = pmov %p4223_p0 }
  0x8b   : > { %3014 = vmatprep.mubr.msk.f32.mxu1 %vm3587_vm0, %v3588_v1  ;;  %3174 = vmatprep.subr.bf16.mxu0 %v3586_v0  ;;  %p4226_p5 = pmov %p4223_p0  ;;  %p4227_p11 = pmov %p4223_p0 }
  0x8c   : > { %3177 = vmatprep.subr.bf16.mxu1 %v3586_v0  ;;  %s4021_s18 = scalar_select %p4224_p3, 4, 3 }
  0x8d   : > { %s4050_s9 = scalar_select %p4225_p1, 5, 2 }
  0x8e   : > { %p4228_p8 = scmp.ne.s32.totalorder %s4209_s12, 0 }
 0x153   : > { %v444_v24 = vpop.f32.mrb[0].mxu0  ;;  %v526_v27 = vpop.f32.mrb[0].mxu1 }
 0x154   : > { %v445_v25 = vadd.f32 %v2817_v22, %v444_v24  ;;  %v2967_v26 = vpop.f32.mrb[1].mxu0  ;;  %v527_v28 = vadd.f32 %v2822_v23, %v526_v27  ;;  %v2974_v29 = vpop.f32.mrb[1].mxu1 }
 0x156   : > { %448 = vst.msk [vmem:[#allocation3] sm:$0xff] %vm374_vm2, %v445_v25  ;;  %530 = vst.msk [vmem:[#allocation4] sm:$0xff] %vm374_vm2, %v527_v28 }
 0x157   : > { %v608_v32 = vpop.f32.mrb[2].mxu0  ;;  %v700_v33 = vpop.f32.mrb[2].mxu1 }
 0x158   : > { %v609_v34 = vadd.f32 %v2827_v30, %v608_v32  ;;  %v2981_v35 = vpop.f32.mrb[3].mxu0  ;;  %v2988_v36 = vpop.f32.mrb[3].mxu1  ;;  %v701_v38 = vadd.f32 %v700_v33, %v3893_v31 }
 0x15a   : > { %612 = vst.msk [vmem:[#allocation5] sm:$0xff] %vm374_vm2, %v609_v34 }
 0x15b   : > { %v770_v39 = vpop.f32.mrb[4].mxu0 }
 0x15c   : > { %v2995_v40 = vpop.f32.mrb[5].mxu0  ;;  %v840_v41 = vpop.f32.mrb[4].mxu1  ;;  %v771_v43 = vadd.f32 %v3897_v37, %v770_v39 }
 0x15d   : > { %v845_v42 = vld [vmem:[%s844_s1] sm:$0x1]  ;;  %v3002_v44 = vpop.f32.mrb[5].mxu1  ;;  %v841_v55 = vadd.f32 %v3905_v53, %v840_v41  ;;  %s3992_s1 = scalar_select %p4223_p0, 3, 4 }
 0x15e   : > { %v846_v45 = vadd.f32 %v845_v42, %v701_v38  ;;  %v854_v46 = vld [vmem:[%s853_s2] sm:$0x1] }
 0x15f   : > { %v855_v48 = vadd.f32 %v854_v46, %v771_v43  ;;  %v1090_v10 = vld [vmem:[%s1089_s19] sm:$0x1]  ;;  %s1579_s2 = scalar_lea.vmem [#allocation3], %s3992_s1  ;;  %s1597_s20 = scalar_lea.vmem [#allocation5], %s3992_s1 }
 0x160   : > { %v2838_v47 = vmul.f32 -1.442695, %v846_v45  ;;  %v1099_v16 = vld [vmem:[%s1098_s26] sm:$0x1]  ;;  %s1824_s19 = scalar_lea.vmem [#allocation3], %s4021_s18  ;;  %s1833_s26 = scalar_lea.vmem [#allocation4], %s4021_s18 }
 0x161   : > { %v2839_v49 = vmul.f32 -1.442695, %v855_v48  ;;  %v863_v58 = vld [vmem:[%s862_s30] sm:$0x1]  ;;  %s1588_s30 = scalar_lea.vmem [#allocation4], %s3992_s1 }
 0x162   : > { %3309 = vpow2.f32 %v2838_v47  ;;  %v1108_v29 = vld [vmem:[%s1107_s7] sm:$0x1]  ;;  %s1842_s7 = scalar_lea.vmem [#allocation5], %s4021_s18 }
 0x163   : > { %3311 = vpow2.f32 %v2839_v49  ;;  %v1335_v45 = vld [vmem:[%s1334_s29] sm:$0x1]  ;;  %s2069_s29 = scalar_lea.vmem [#allocation3], %s4050_s9 }
 0x16c   : > { %v3310_v50 = vpop.eup %3309 }
 0x16d   : > { %v850_v51 = vadd.f32 1.0, %v3310_v50  ;;  %v3312_v52 = vpop.eup %3311  ;;  %v1344_v50 = vld [vmem:[%s1343_s8] sm:$0x1]  ;;  %s2078_s8 = scalar_lea.vmem [#allocation4], %s4050_s9 }
 0x16e   : > { %v859_v54 = vadd.f32 1.0, %v3312_v52 }
 0x16f   : > { %3313 = vrcp.f32 %v850_v51 }
 0x170   : > { %3315 = vrcp.f32 %v859_v54 }
 0x179   : > { %v3314_v56 = vpop.eup %3313 }
 0x17a   : > { %v864_v57 = vmul.f32 %v3314_v56, %v841_v55  ;;  %v3316_v60 = vpop.eup %3315 }
 0x17b   : > { %v867_v61 = vsub.f32 1.0, %v3316_v60  ;;  %v869_v63 = vmul.f32 %v3316_v60, %v3846_v20 }
 0x17c   : > { %v865_v59 = vadd.f32 %v864_v57, %v863_v58 }
 0x17e   : > { %3317 = vtanh.f32 %v865_v59 }
 0x188   : > { %v3318_v62 = vpop.eup %3317 }
 0x189   : > { %v868_v2 = vmul.f32 %v3318_v62, %v867_v61  ;;  %v1353_v62 = vld [vmem:[%s1352_s13] sm:$0x1]  ;;  %s2087_s13 = scalar_lea.vmem [#allocation5], %s4050_s9 }
 0x18b   : > { %v870_v3 = vadd.f32 %v869_v63, %v868_v2 }
 0x18d   : > { %871 = vst.msk [vmem:[#allocation2] sm:$0x1] %vm613_vm1, %v870_v3  ;;  %873 = vst.msk [vmem:[%s872_s27] sm:$0x1] %vm613_vm1, %v870_v3  ;;  %s1607_s27 = scalar_lea.vmem %s3911_s11, %s3992_s1 [#allocation12] }
 0x18e   : > { %s4078_s1 = scalar_select %p4226_p5, 6, 1 }
 0x194   : > { %v875_v4 = vld [vmem:[#allocation2] sm:$0x1] }
 0x195   : > { %3008 = vmatmul.mubr.msk.f32.vlgmr.msra.gmra.mrb[6].mxu0 %vm374_vm2, %v875_v4  ;;  %3015 = vmatmul.mubr.msk.f32.vlgmr.msra.gmra.mrb[6].mxu1 %vm374_vm2, %v875_v4 }
 0x196   : > { %3176 = vmatpush3.bf16.msra.mxu0 %v3848_v21  ;;  %3021 = vmatprep.mubr.msk.f32.mxu0 %vm3587_vm0, %v3588_v1 }
 0x197   : > { %3179 = vmatpush3.bf16.msra.mxu1 %v3836_v14  ;;  %3180 = vmatprep.subr.bf16.mxu0 %v3586_v0 }
 0x198   : > { %3028 = vmatprep.mubr.msk.f32.mxu1 %vm3587_vm0, %v3588_v1  ;;  %3183 = vmatprep.subr.bf16.mxu1 %v3586_v0 }
 0x199   : > { %3022 = vmatmul.mubr.msk.f32.vlgmr.msra.gmra.mrb[8].mxu0 %vm374_vm2, %v875_v4 }
 0x19a   : > { %3182 = vmatpush3.bf16.msra.mxu0 %v3841_v19  ;;  %3035 = vmatprep.mubr.msk.f32.mxu0 %vm3587_vm0, %v3588_v1 }
 0x19b   : > { %3186 = vmatprep.subr.bf16.mxu0 %v3586_v0 }
 0x268   : > { %v945_v5 = vpop.f32.mrb[6].mxu0  ;;  %v1015_v6 = vpop.f32.mrb[6].mxu1 }
 0x269   : > { %v946_v7 = vadd.f32 %v945_v5, %v3893_v31  ;;  %v3009_v8 = vpop.f32.mrb[7].mxu0  ;;  %v3016_v9 = vpop.f32.mrb[7].mxu1  ;;  %v1016_v11 = vadd.f32 %v3897_v37, %v1015_v6 }
 0x26b   : > { %v1091_v12 = vadd.f32 %v1090_v10, %v946_v7  ;;  %v1100_v18 = vadd.f32 %v1099_v16, %v1016_v11 }
 0x26c   : > { %v1085_v13 = vpop.f32.mrb[8].mxu0 }
 0x26d   : > { %v2843_v15 = vmul.f32 -1.442695, %v1091_v12  ;;  %v3023_v17 = vpop.f32.mrb[9].mxu0  ;;  %v2844_v20 = vmul.f32 -1.442695, %v1100_v18  ;;  %v1086_v26 = vadd.f32 %v3905_v53, %v1085_v13 }
 0x26f   : > { %3319 = vpow2.f32 %v2843_v15  ;;  %v1580_v15 = vld [vmem:[%s1579_s2] sm:$0x1]  ;;  %s2314_s2 = scalar_lea.vmem [#allocation3], %s4078_s1 }
 0x270   : > { %3321 = vpow2.f32 %v2844_v20 }
 0x279   : > { %v3320_v22 = vpop.eup %3319 }
 0x27a   : > { %v1095_v23 = vadd.f32 1.0, %v3320_v22  ;;  %v3322_v24 = vpop.eup %3321  ;;  %v1589_v22 = vld [vmem:[%s1588_s30] sm:$0x1]  ;;  %s2323_s30 = scalar_lea.vmem [#allocation4], %s4078_s1 }
 0x27b   : > { %v1104_v25 = vadd.f32 1.0, %v3322_v24 }
 0x27c   : > { %3323 = vrcp.f32 %v1095_v23 }
 0x27d   : > { %3325 = vrcp.f32 %v1104_v25 }
 0x286   : > { %v3324_v27 = vpop.eup %3323 }
 0x287   : > { %v1109_v28 = vmul.f32 %v3324_v27, %v1086_v26  ;;  %v3326_v32 = vpop.eup %3325 }
 0x288   : > { %v1112_v33 = vsub.f32 1.0, %v3326_v32  ;;  %v1114_v35 = vmul.f32 %v3326_v32, %v875_v4 }
 0x289   : > { %v1110_v30 = vadd.f32 %v1109_v28, %v1108_v29 }
 0x28b   : > { %3327 = vtanh.f32 %v1110_v30 }
 0x295   : > { %v3328_v34 = vpop.eup %3327 }
 0x296   : > { %v1113_v36 = vmul.f32 %v3328_v34, %v1112_v33  ;;  %v1598_v34 = vld [vmem:[%s1597_s20] sm:$0x1]  ;;  %s2332_s20 = scalar_lea.vmem [#allocation5], %s4078_s1 }
 0x298   : > { %v1115_v38 = vadd.f32 %v1114_v35, %v1113_v36 }
 0x29a   : > { %1116 = vst.msk [vmem:[#allocation2] sm:$0x1] %vm613_vm1, %v1115_v38  ;;  %1118 = vst.msk [vmem:[%s1117_s10] sm:$0x1] %vm613_vm1, %v1115_v38  ;;  %s1852_s10 = scalar_lea.vmem %s3911_s11, %s4021_s18 [#allocation12] }
 0x29b   : > { %s4098_s18 = scalar_select %p4227_p11, 7, 0 }
 0x2a1   : > { %v1120_v39 = vld [vmem:[#allocation2] sm:$0x1] }
 0x2a2   : > { %3029 = vmatmul.mubr.msk.f32.vlgmr.msra.gmra.mrb[8].mxu1 %vm374_vm2, %v1120_v39  ;;  %3036 = vmatmul.mubr.msk.f32.vlgmr.msra.gmra.mrb[10].mxu0 %vm374_vm2, %v1120_v39 }
 0x2a3   : > { %3185 = vmatpush3.bf16.msra.mxu1 %v3848_v21  ;;  %3042 = vmatprep.mubr.msk.f32.mxu1 %vm3587_vm0, %v3588_v1 }
 0x2a4   : > { %3188 = vmatpush3.bf16.msra.mxu0 %v3836_v14  ;;  %3189 = vmatprep.subr.bf16.mxu1 %v3586_v0 }
 0x2a5   : > { %3049 = vmatprep.mubr.msk.f32.mxu0 %vm3587_vm0, %v3588_v1  ;;  %3192 = vmatprep.subr.bf16.mxu0 %v3586_v0 }
 0x2a6   : > { %3043 = vmatmul.mubr.msk.f32.vlgmr.msra.gmra.mrb[10].mxu1 %vm374_vm2, %v1120_v39 }
 0x2a7   : > { %3191 = vmatpush3.bf16.msra.mxu1 %v3841_v19  ;;  %3056 = vmatprep.mubr.msk.f32.mxu1 %vm3587_vm0, %v3588_v1 }
 0x2a8   : > { %3195 = vmatprep.subr.bf16.mxu1 %v3586_v0 }
 0x375   : > { %v1190_v40 = vpop.f32.mrb[8].mxu1  ;;  %v1260_v41 = vpop.f32.mrb[10].mxu0 }
 0x376   : > { %v1191_v42 = vadd.f32 %v1190_v40, %v3893_v31  ;;  %v3030_v43 = vpop.f32.mrb[9].mxu1  ;;  %v3037_v44 = vpop.f32.mrb[11].mxu0  ;;  %v1261_v46 = vadd.f32 %v3897_v37, %v1260_v41 }
 0x378   : > { %v1336_v47 = vadd.f32 %v1335_v45, %v1191_v42  ;;  %v1345_v52 = vadd.f32 %v1344_v50, %v1261_v46 }
 0x379   : > { %v1330_v48 = vpop.f32.mrb[10].mxu1 }
 0x37a   : > { %v2848_v49 = vmul.f32 -1.442695, %v1336_v47  ;;  %v3044_v51 = vpop.f32.mrb[11].mxu1  ;;  %v2849_v54 = vmul.f32 -1.442695, %v1345_v52  ;;  %v1331_v59 = vadd.f32 %v3905_v53, %v1330_v48 }
 0x37c   : > { %3329 = vpow2.f32 %v2848_v49  ;;  %v1825_v49 = vld [vmem:[%s1824_s19] sm:$0x1]  ;;  %s2559_s19 = scalar_lea.vmem [#allocation3], %s4098_s18 }
 0x37d   : > { %3331 = vpow2.f32 %v2849_v54 }
 0x386   : > { %v3330_v55 = vpop.eup %3329 }
 0x387   : > { %v1340_v56 = vadd.f32 1.0, %v3330_v55  ;;  %v3332_v57 = vpop.eup %3331  ;;  %v1834_v55 = vld [vmem:[%s1833_s26] sm:$0x1]  ;;  %s2568_s26 = scalar_lea.vmem [#allocation4], %s4098_s18 }
 0x388   : > { %v1349_v58 = vadd.f32 1.0, %v3332_v57 }
 0x389   : > { %3333 = vrcp.f32 %v1340_v56 }
 0x38a   : > { %3335 = vrcp.f32 %v1349_v58 }
 0x393   : > { %v3334_v60 = vpop.eup %3333 }
 0x394   : > { %v1354_v61 = vmul.f32 %v3334_v60, %v1331_v59  ;;  %v3336_v2 = vpop.eup %3335 }
 0x395   : > { %v1357_v3 = vsub.f32 1.0, %v3336_v2  ;;  %v1359_v5 = vmul.f32 %v3336_v2, %v1120_v39 }
 0x396   : > { %v1355_v63 = vadd.f32 %v1354_v61, %v1353_v62 }
 0x398   : > { %3337 = vtanh.f32 %v1355_v63 }
 0x3a2   : > { %v3338_v4 = vpop.eup %3337 }
 0x3a3   : > { %v1358_v6 = vmul.f32 %v3338_v4, %v1357_v3  ;;  %v1843_v4 = vld [vmem:[%s1842_s7] sm:$0x1]  ;;  %s2577_s7 = scalar_lea.vmem [#allocation5], %s4098_s18 }
 0x3a5   : > { %v1360_v7 = vadd.f32 %v1359_v5, %v1358_v6 }
 0x3a7   : > { %1361 = vst.msk [vmem:[#allocation2] sm:$0x1] %vm613_vm1, %v1360_v7  ;;  %1363 = vst.msk [vmem:[%s1362_s15] sm:$0x1] %vm613_vm1, %v1360_v7  ;;  %s2097_s15 = scalar_lea.vmem %s3911_s11, %s4050_s9 [#allocation12]  ;;  %s2609_s9 = sshll.u32 %s3911_s11, 4  ;;  %s4115_s9 = int_to_ptr.vmem [resolvable:$true] %s2609_s9 }
 0x3ae   : > { %v1365_v8 = vld [vmem:[#allocation2] sm:$0x1] }
 0x3af   : > { %3050 = vmatmul.mubr.msk.f32.vlgmr.msra.gmra.mrb[12].mxu0 %vm374_vm2, %v1365_v8  ;;  %3057 = vmatmul.mubr.msk.f32.vlgmr.msra.gmra.mrb[12].mxu1 %vm374_vm2, %v1365_v8 }
 0x3b0   : > { %3194 = vmatpush3.bf16.msra.mxu0 %v3848_v21  ;;  %3063 = vmatprep.mubr.msk.f32.mxu0 %vm3587_vm0, %v3588_v1 }
 0x3b1   : > { %3197 = vmatpush3.bf16.msra.mxu1 %v3836_v14  ;;  %3198 = vmatprep.subr.bf16.mxu0 %v3586_v0 }
 0x3b2   : > { %3070 = vmatprep.mubr.msk.f32.mxu1 %vm3587_vm0, %v3588_v1  ;;  %3201 = vmatprep.subr.bf16.mxu1 %v3586_v0 }
 0x3b3   : > { %3064 = vmatmul.mubr.msk.f32.vlgmr.msra.gmra.mrb[14].mxu0 %vm374_vm2, %v1365_v8 }
 0x3b4   : > { %3200 = vmatpush3.bf16.msra.mxu0 %v3841_v19  ;;  %3077 = vmatprep.mubr.msk.f32.mxu0 %vm3587_vm0, %v3588_v1 }
 0x3b5   : > { %3204 = vmatprep.subr.bf16.mxu0 %v3586_v0 }
 0x482   : > { %v1435_v9 = vpop.f32.mrb[12].mxu0  ;;  %v1505_v10 = vpop.f32.mrb[12].mxu1 }
 0x483   : > { %v1436_v11 = vadd.f32 %v1435_v9, %v3893_v31  ;;  %v3051_v12 = vpop.f32.mrb[13].mxu0  ;;  %v3058_v13 = vpop.f32.mrb[13].mxu1  ;;  %v1506_v16 = vadd.f32 %v3897_v37, %v1505_v10 }
 0x485   : > { %v1581_v17 = vadd.f32 %v1580_v15, %v1436_v11  ;;  %v1590_v24 = vadd.f32 %v1589_v22, %v1506_v16 }
 0x486   : > { %v1575_v18 = vpop.f32.mrb[14].mxu0 }
 0x487   : > { %v2853_v20 = vmul.f32 -1.442695, %v1581_v17  ;;  %v3065_v23 = vpop.f32.mrb[15].mxu0  ;;  %v2854_v25 = vmul.f32 -1.442695, %v1590_v24  ;;  %v1576_v30 = vadd.f32 %v3905_v53, %v1575_v18 }
 0x489   : > { %3339 = vpow2.f32 %v2853_v20  ;;  %v2070_v20 = vld [vmem:[%s2069_s29] sm:$0x1]  ;;  %s2587_s29 = scalar_lea.vmem %s3911_s11, %s4098_s18 [#allocation12] }
 0x48a   : > { %3341 = vpow2.f32 %v2854_v25 }
 0x493   : > { %v3340_v26 = vpop.eup %3339 }
 0x494   : > { %v1585_v27 = vadd.f32 1.0, %v3340_v26  ;;  %v3342_v28 = vpop.eup %3341  ;;  %v2079_v26 = vld [vmem:[%s2078_s8] sm:$0x1] }
 0x495   : > { %v1594_v29 = vadd.f32 1.0, %v3342_v28 }
 0x496   : > { %3343 = vrcp.f32 %v1585_v27 }
 0x497   : > { %3345 = vrcp.f32 %v1594_v29 }
 0x4a0   : > { %v3344_v32 = vpop.eup %3343 }
 0x4a1   : > { %v1599_v33 = vmul.f32 %v3344_v32, %v1576_v30  ;;  %v3346_v36 = vpop.eup %3345 }
 0x4a2   : > { %v1602_v38 = vsub.f32 1.0, %v3346_v36  ;;  %v1604_v40 = vmul.f32 %v3346_v36, %v1365_v8 }
 0x4a3   : > { %v1600_v35 = vadd.f32 %v1599_v33, %v1598_v34 }
 0x4a5   : > { %3347 = vtanh.f32 %v1600_v35 }
 0x4af   : > { %v3348_v39 = vpop.eup %3347 }
 0x4b0   : > { %v1603_v41 = vmul.f32 %v3348_v39, %v1602_v38  ;;  %v2088_v39 = vld [vmem:[%s2087_s13] sm:$0x1] }
 0x4b2   : > { %v1605_v42 = vadd.f32 %v1604_v40, %v1603_v41 }
 0x4b4   : > { %1606 = vst.msk [vmem:[#allocation2] sm:$0x1] %vm613_vm1, %v1605_v42  ;;  %1608 = vst.msk [vmem:[%s1607_s27] sm:$0x1] %vm613_vm1, %v1605_v42  ;;  %s2342_s27 = scalar_lea.vmem %s3911_s11, %s4078_s1 [#allocation12]  ;;  %s2592_s1 = scalar_lea.sflag [#allocation8], %s3820_s17 }
 0x4b5   : > { %s3589_s11 = smov [#allocation12]  }
 0x4bb   : > { %v1610_v43 = vld [vmem:[#allocation2] sm:$0x1] }
 0x4bc   : > { %3071 = vmatmul.mubr.msk.f32.vlgmr.msra.gmra.mrb[14].mxu1 %vm374_vm2, %v1610_v43  ;;  %3078 = vmatmul.mubr.msk.f32.vlgmr.msra.gmra.mrb[16].mxu0 %vm374_vm2, %v1610_v43 }
 0x4bd   : > { %3203 = vmatpush3.bf16.msra.mxu1 %v3848_v21  ;;  %3084 = vmatprep.mubr.msk.f32.mxu1 %vm3587_vm0, %v3588_v1 }
 0x4be   : > { %3206 = vmatpush3.bf16.msra.mxu0 %v3836_v14  ;;  %3207 = vmatprep.subr.bf16.mxu1 %v3586_v0 }
 0x4bf   : > { %3091 = vmatprep.mubr.msk.f32.mxu0 %vm3587_vm0, %v3588_v1  ;;  %3210 = vmatprep.subr.bf16.mxu0 %v3586_v0 }
 0x4c0   : > { %3085 = vmatmul.mubr.msk.f32.vlgmr.msra.gmra.mrb[16].mxu1 %vm374_vm2, %v1610_v43 }
 0x4c1   : > { %3209 = vmatpush3.bf16.msra.mxu1 %v3841_v19  ;;  %3098 = vmatprep.mubr.msk.f32.mxu1 %vm3587_vm0, %v3588_v1 }
 0x4c2   : > { %3213 = vmatprep.subr.bf16.mxu1 %v3586_v0 }
 0x58f   : > { %v1680_v44 = vpop.f32.mrb[14].mxu1  ;;  %v1750_v45 = vpop.f32.mrb[16].mxu0 }
 0x590   : > { %v1681_v46 = vadd.f32 %v1680_v44, %v3893_v31  ;;  %v3072_v47 = vpop.f32.mrb[15].mxu1  ;;  %v3079_v48 = vpop.f32.mrb[17].mxu0  ;;  %v1751_v50 = vadd.f32 %v3897_v37, %v1750_v45 }
 0x592   : > { %v1826_v51 = vadd.f32 %v1825_v49, %v1681_v46  ;;  %v1835_v57 = vadd.f32 %v1834_v55, %v1751_v50 }
 0x593   : > { %v1820_v52 = vpop.f32.mrb[16].mxu1 }
 0x594   : > { %v2858_v54 = vmul.f32 -1.442695, %v1826_v51  ;;  %v3086_v56 = vpop.f32.mrb[17].mxu1  ;;  %v2859_v58 = vmul.f32 -1.442695, %v1835_v57  ;;  %v1821_v63 = vadd.f32 %v3905_v53, %v1820_v52 }
 0x595   : > { %v2324_v56 = vld [vmem:[%s2323_s30] sm:$0x1]  ;;  %s3481_s30 = sshll.u32 %s3589_s11, 4  ;;  %s3482_s30 = int_to_ptr.vmem [resolvable:$false] %s3481_s30 }
 0x596   : > { %3349 = vpow2.f32 %v2858_v54  ;;  %p3484_p13 = scmp.lt.s32.totalorder %s4115_s9, %s3482_s30 }
 0x597   : > { %3351 = vpow2.f32 %v2859_v58 }
 0x5a0   : > { %v3350_v59 = vpop.eup %3349 }
 0x5a1   : > { %v1830_v60 = vadd.f32 1.0, %v3350_v59  ;;  %v3352_v61 = vpop.eup %3351 }
 0x5a2   : > { %v1839_v62 = vadd.f32 1.0, %v3352_v61 }
 0x5a3   : > { %3353 = vrcp.f32 %v1830_v60 }
 0x5a4   : > { %3355 = vrcp.f32 %v1839_v62 }
 0x5ad   : > { %v3354_v2 = vpop.eup %3353 }
 0x5ae   : > { %v1844_v3 = vmul.f32 %v3354_v2, %v1821_v63  ;;  %v3356_v6 = vpop.eup %3355 }
 0x5af   : > { %v1847_v7 = vsub.f32 1.0, %v3356_v6  ;;  %v1849_v9 = vmul.f32 %v3356_v6, %v1610_v43 }
 0x5b0   : > { %v1845_v5 = vadd.f32 %v1844_v3, %v1843_v4 }
 0x5b2   : > { %3357 = vtanh.f32 %v1845_v5  ;;  %v2333_v5 = vld [vmem:[%s2332_s20] sm:$0x1]  ;;  %s3483_s20 = scalar_lea.vmem %s3482_s30, 256 }
 0x5bc   : > { %v3358_v8 = vpop.eup %3357 }
 0x5bd   : > { %v1848_v10 = vmul.f32 %v3358_v8, %v1847_v7 }
 0x5bf   : > { %v1850_v11 = vadd.f32 %v1849_v9, %v1848_v10 }
 0x5c1   : > { %1851 = vst.msk [vmem:[#allocation2] sm:$0x1] %vm613_vm1, %v1850_v11  ;;  %1853 = vst.msk [vmem:[%s1852_s10] sm:$0x1] %vm613_vm1, %v1850_v11  ;;  %s2876_s10 = sshll.u32 %s3714_s16, 7 }
 0x5c8   : > { %v1855_v12 = vld [vmem:[#allocation2] sm:$0x1] }
 0x5c9   : > { %3092 = vmatmul.mubr.msk.f32.vlgmr.msra.gmra.mrb[18].mxu0 %vm374_vm2, %v1855_v12  ;;  %3099 = vmatmul.mubr.msk.f32.vlgmr.msra.gmra.mrb[18].mxu1 %vm374_vm2, %v1855_v12 }
 0x5ca   : > { %3212 = vmatpush3.bf16.msra.mxu0 %v3848_v21  ;;  %3105 = vmatprep.mubr.msk.f32.mxu0 %vm3587_vm0, %v3588_v1 }
 0x5cb   : > { %3215 = vmatpush3.bf16.msra.mxu1 %v3836_v14  ;;  %3216 = vmatprep.subr.bf16.mxu0 %v3586_v0 }
 0x5cc   : > { %3112 = vmatprep.mubr.msk.f32.mxu1 %vm3587_vm0, %v3588_v1  ;;  %3219 = vmatprep.subr.bf16.mxu1 %v3586_v0 }
 0x5cd   : > { %3106 = vmatmul.mubr.msk.f32.vlgmr.msra.gmra.mrb[20].mxu0 %vm374_vm2, %v1855_v12 }
 0x5ce   : > { %3218 = vmatpush3.bf16.msra.mxu0 %v3841_v19  ;;  %3119 = vmatprep.mubr.msk.f32.mxu0 %vm3587_vm0, %v3588_v1 }
 0x5cf   : > { %3222 = vmatprep.subr.bf16.mxu0 %v3586_v0 }
 0x69c   : > { %v1925_v13 = vpop.f32.mrb[18].mxu0  ;;  %v1995_v15 = vpop.f32.mrb[18].mxu1 }
 0x69d   : > { %v1926_v16 = vadd.f32 %v1925_v13, %v3893_v31  ;;  %v3093_v17 = vpop.f32.mrb[19].mxu0  ;;  %v3100_v18 = vpop.f32.mrb[19].mxu1  ;;  %v1996_v22 = vadd.f32 %v3897_v37, %v1995_v15 }
 0x69f   : > { %v2071_v23 = vadd.f32 %v2070_v20, %v1926_v16  ;;  %v2080_v28 = vadd.f32 %v2079_v26, %v1996_v22  ;;  %v2560_v22 = vld [vmem:[%s2559_s19] sm:$0x1] }
 0x6a0   : > { %v2065_v24 = vpop.f32.mrb[20].mxu0 }
 0x6a1   : > { %v2863_v25 = vmul.f32 -1.442695, %v2071_v23  ;;  %v3107_v27 = vpop.f32.mrb[21].mxu0  ;;  %v2864_v29 = vmul.f32 -1.442695, %v2080_v28  ;;  %v2066_v35 = vadd.f32 %v3905_v53, %v2065_v24 }
 0x6a3   : > { %3359 = vpow2.f32 %v2863_v25  ;;  %v2569_v25 = vld [vmem:[%s2568_s26] sm:$0x1] }
 0x6a4   : > { %3361 = vpow2.f32 %v2864_v29 }
 0x6ad   : > { %v3360_v30 = vpop.eup %3359 }
 0x6ae   : > { %v2075_v32 = vadd.f32 1.0, %v3360_v30  ;;  %v3362_v33 = vpop.eup %3361 }
 0x6af   : > { %v2084_v34 = vadd.f32 1.0, %v3362_v33 }
 0x6b0   : > { %3363 = vrcp.f32 %v2075_v32 }
 0x6b1   : > { %3365 = vrcp.f32 %v2084_v34 }
 0x6ba   : > { %v3364_v36 = vpop.eup %3363 }
 0x6bb   : > { %v2089_v38 = vmul.f32 %v3364_v36, %v2066_v35  ;;  %v3366_v41 = vpop.eup %3365  ;;  %v2578_v35 = vld [vmem:[%s2577_s7] sm:$0x1] }
 0x6bc   : > { %v2092_v42 = vsub.f32 1.0, %v3366_v41  ;;  %v2094_v44 = vmul.f32 %v3366_v41, %v1855_v12 }
 0x6bd   : > { %v2090_v40 = vadd.f32 %v2089_v38, %v2088_v39 }
 0x6bf   : > { %3367 = vtanh.f32 %v2090_v40 }
 0x6c9   : > { %v3368_v43 = vpop.eup %3367 }
 0x6ca   : > { %v2093_v45 = vmul.f32 %v3368_v43, %v2092_v42 }
 0x6cc   : > { %v2095_v46 = vadd.f32 %v2094_v44, %v2093_v45 }
 0x6ce   : > { %2096 = vst.msk [vmem:[#allocation2] sm:$0x1] %vm613_vm1, %v2095_v46  ;;  %2098 = vst.msk [vmem:[%s2097_s15] sm:$0x1] %vm613_vm1, %v2095_v46  ;;  %s4113_s15 = scalar_lea.hbm %s4196_s5, %s2876_s10 }
 0x6d5   : > { %v2100_v47 = vld [vmem:[#allocation2] sm:$0x1] }
 0x6d6   : > { %3113 = vmatmul.mubr.msk.f32.vlgmr.msra.gmra.mrb[20].mxu1 %vm374_vm2, %v2100_v47  ;;  %3120 = vmatmul.mubr.msk.f32.vlgmr.msra.gmra.mrb[22].mxu0 %vm374_vm2, %v2100_v47 }
 0x6d7   : > { %3221 = vmatpush3.bf16.msra.mxu1 %v3848_v21  ;;  %3126 = vmatprep.mubr.msk.f32.mxu1 %vm3587_vm0, %v3588_v1 }
 0x6d8   : > { %3224 = vmatpush3.bf16.msra.mxu0 %v3836_v14  ;;  %3225 = vmatprep.subr.bf16.mxu1 %v3586_v0 }
 0x6d9   : > { %3133 = vmatprep.mubr.msk.f32.mxu0 %vm3587_vm0, %v3588_v1  ;;  %3228 = vmatprep.subr.bf16.mxu0 %v3586_v0  ;;  %v2315_v0 = vld [vmem:[%s2314_s2] sm:$0x1]  ;;  %s3477_s2 = scalar_lea.vmem %s4115_s9, 128 }
 0x6da   : > { %3127 = vmatmul.mubr.msk.f32.vlgmr.msra.gmra.mrb[22].mxu1 %vm374_vm2, %v2100_v47  ;;  %p3478_p9 = scmp.ne.s32.totalorder %s4115_s9, %s3477_s2  ;;  %p3485_p7 = scmp.lt.s32.totalorder %s3483_s20, %s3477_s2 }
 0x6db   : > { %3227 = vmatpush3.bf16.msra.mxu1 %v3841_v19  ;;  %3140 = vmatprep.mubr.msk.f32.mxu1 %vm3587_vm0, %v3588_v1 }
 0x6dc   : > { %p3479_p4 = pnand %p3478_p9, %p4228_p8  ;;  %p3486_p12 = por %p3485_p7, %p3484_p13 }
 0x6de   : > { %p3480_p10 = pneg %p3479_p4 }
 0x6e0   : > { %p3487_p2 = pnand %p3486_p12, %p3480_p10 }
 0x7a9   : > { %v2170_v14 = vpop.f32.mrb[20].mxu1  ;;  %v2240_v48 = vpop.f32.mrb[22].mxu0 }
 0x7aa   : > { %v2171_v49 = vadd.f32 %v2170_v14, %v3893_v31  ;;  %v3114_v50 = vpop.f32.mrb[21].mxu1  ;;  %v3121_v51 = vpop.f32.mrb[23].mxu0  ;;  %v2241_v52 = vadd.f32 %v3897_v37, %v2240_v48 }
 0x7ac   : > { %v2316_v54 = vadd.f32 %v2315_v0, %v2171_v49  ;;  %v2325_v58 = vadd.f32 %v2324_v56, %v2241_v52 }
 0x7ad   : > { %v2310_v19 = vpop.f32.mrb[22].mxu1 }
 0x7ae   : > { %v2868_v55 = vmul.f32 -1.442695, %v2316_v54  ;;  %v3128_v57 = vpop.f32.mrb[23].mxu1  ;;  %v2869_v59 = vmul.f32 -1.442695, %v2325_v58  ;;  %v2311_v2 = vadd.f32 %v3905_v53, %v2310_v19 }
 0x7b0   : > { %3369 = vpow2.f32 %v2868_v55 }
 0x7b1   : > { %3371 = vpow2.f32 %v2869_v59 }
 0x7ba   : > { %v3370_v60 = vpop.eup %3369 }
 0x7bb   : > { %v2320_v61 = vadd.f32 1.0, %v3370_v60  ;;  %v3372_v62 = vpop.eup %3371 }
 0x7bc   : > { %v2329_v63 = vadd.f32 1.0, %v3372_v62 }
 0x7bd   : > { %3373 = vrcp.f32 %v2320_v61 }
 0x7be   : > { %3375 = vrcp.f32 %v2329_v63 }
 0x7c7   : > { %v3374_v3 = vpop.eup %3373 }
 0x7c8   : > { %v2334_v4 = vmul.f32 %v3374_v3, %v2311_v2  ;;  %v3376_v7 = vpop.eup %3375 }
 0x7c9   : > { %v2337_v8 = vsub.f32 1.0, %v3376_v7  ;;  %v2339_v10 = vmul.f32 %v3376_v7, %v2100_v47 }
 0x7ca   : > { %v2335_v6 = vadd.f32 %v2334_v4, %v2333_v5 }
 0x7cc   : > { %3377 = vtanh.f32 %v2335_v6 }
 0x7d6   : > { %v3378_v9 = vpop.eup %3377 }
 0x7d7   : > { %v2338_v11 = vmul.f32 %v3378_v9, %v2337_v8 }
 0x7d9   : > { %v2340_v12 = vadd.f32 %v2339_v10, %v2338_v11 }
 0x7db   : > { %2341 = vst.msk [vmem:[#allocation2] sm:$0x1] %vm613_vm1, %v2340_v12  ;;  %2343 = vst.msk [vmem:[%s2342_s27] sm:$0x1] %vm613_vm1, %v2340_v12 }
 0x7e2   : > { %v2345_v13 = vld [vmem:[#allocation2] sm:$0x1] }
 0x7e3   : > { %3134 = vmatmul.mubr.msk.f32.vlgmr.msra.gmra.mrb[24].mxu0 %vm374_vm2, %v2345_v13  ;;  %3141 = vmatmul.mubr.msk.f32.vlgmr.msra.gmra.mrb[24].mxu1 %vm374_vm2, %v2345_v13 }
 0x7e4   : > { %3230 = vmatpush3.bf16.msra.mxu0 %v3848_v21  ;;  %3147 = vmatprep.mubr.msk.f32.mxu0 %vm3587_vm0, %v3588_v1 }
 0x7e7   : > { %3148 = vmatmul.mubr.msk.f32.vlgmr.msra.gmra.mrb[26].mxu0 %vm374_vm2, %v2345_v13 }
 0x8b6   : > { %v2415_v15 = vpop.f32.mrb[24].mxu0  ;;  %v2485_v16 = vpop.f32.mrb[24].mxu1 }
 0x8b7   : > { %v2416_v17 = vadd.f32 %v2415_v15, %v3893_v31  ;;  %v3135_v18 = vpop.f32.mrb[25].mxu0  ;;  %v3142_v20 = vpop.f32.mrb[25].mxu1  ;;  %v2486_v21 = vadd.f32 %v3897_v37, %v2485_v16 }
 0x8b9   : > { %v2561_v23 = vadd.f32 %v2560_v22, %v2416_v17  ;;  %v2570_v27 = vadd.f32 %v2569_v25, %v2486_v21 }
 0x8ba   : > { %v2555_v24 = vpop.f32.mrb[26].mxu0 }
 0x8bb   : > { %v2873_v1 = vmul.f32 -1.442695, %v2561_v23  ;;  %v3149_v26 = vpop.f32.mrb[27].mxu0  ;;  %v2874_v28 = vmul.f32 -1.442695, %v2570_v27  ;;  %v2556_v37 = vadd.f32 %v3905_v53, %v2555_v24 }
 0x8bd   : > { %3379 = vpow2.f32 %v2873_v1 }
 0x8be   : > { %3381 = vpow2.f32 %v2874_v28 }
 0x8c7   : > { %v3380_v29 = vpop.eup %3379 }
 0x8c8   : > { %v2565_v31 = vadd.f32 1.0, %v3380_v29  ;;  %v3382_v30 = vpop.eup %3381 }
 0x8c9   : > { %v2574_v32 = vadd.f32 1.0, %v3382_v30 }
 0x8ca   : > { %3383 = vrcp.f32 %v2565_v31 }
 0x8cb   : > { %3385 = vrcp.f32 %v2574_v32 }
 0x8d4   : > { %v3384_v33 = vpop.eup %3383 }
 0x8d5   : > { %v2579_v34 = vmul.f32 %v3384_v33, %v2556_v37  ;;  %v3386_v38 = vpop.eup %3385 }
 0x8d6   : > { %v2582_v39 = vsub.f32 1.0, %v3386_v38  ;;  %v2584_v41 = vmul.f32 %v3386_v38, %v2345_v13 }
 0x8d7   : > { %v2580_v36 = vadd.f32 %v2579_v34, %v2578_v35 }
 0x8d9   : > { %3387 = vtanh.f32 %v2580_v36 }
 0x8e3   : > { %v3388_v40 = vpop.eup %3387 }
 0x8e4   : > { %v2583_v42 = vmul.f32 %v3388_v40, %v2582_v39 }
 0x8e6   : > { %v2585_v43 = vadd.f32 %v2584_v41, %v2583_v42 }
 0x8e8   : > { %2586 = vst.msk [vmem:[#allocation2] sm:$0x1] %vm613_vm1, %v2585_v43  ;;  %2588 = vst.msk [vmem:[%s2587_s29] sm:$0x1] %vm613_vm1, %v2585_v43 }
 0x8e9   : > { %3490 = shalt.err (!%p3487_p2)
}
 0x8ea   : > { %s3491_s27 = scalar_lea.hbm %s4113_s15, 128  ;;  %s3495_s26 = scalar_lea.hbm %s4196_s5, 256 }
 0x8eb   : > { %p3492_p6 = scmp.ne.s32.totalorder %s4113_s15, %s3491_s27  ;;  %p3496_p1 = scmp.lt.u32.totalorder %s4113_s15, %s4196_s5 }
 0x8ec   : > { %p3497_p5 = scmp.lt.u32.totalorder %s3495_s26, %s3491_s27  ;;  %p3499_p9 = scmp.lt.u32.totalorder %s3491_s27, %s4113_s15 }
 0x8ed   : > { %p3493_p0 = pnand %p3492_p6, %p4228_p8 }
 0x8ee   : > { %p3498_p11 = por %p3497_p5, %p3496_p1 }
 0x8ef   : > { %p3494_p3 = pneg %p3493_p0 }
 0x8f0   : > { %p3500_p4 = por %p3499_p9, %p3498_p11 }
 0x8f2   : > { %p3501_p10 = pnand %p3500_p4, %p3494_p3 }
 0x8f4   : > { %3504 = shalt.err (!%p3501_p10)
}
 0x8f5   : > { %3245 = dma.vmem_to_hbm [thread:$0]  (%p4228_p8), %s4115_s9, 128, %s4113_s15, %s2592_s1   ;;  %v2589_v53 = vld [vmem:[#allocation2] sm:$0x1] }
 0x8f6   : > { %s2877_s29 = sshll.u32 %s3714_s16, 4  ;;  %s355_s8 = scalar_lea.vmem [#allocation13], %s3820_s17 }
 0x8f7   : > { %s2622_s13 = sshll.u32 %s355_s8, 4  ;;  %s4146_s30 = scalar_lea.hbm %s4197_s6, %s2877_s29  ;;  %2590 = vst.msk [vmem:[%s355_s8] sm:$0x1] %vm613_vm1, %v2589_v53  ;;  %s4148_s13 = int_to_ptr.vmem [resolvable:$true] %s2622_s13 }
 0x8f8   : > { %s2597_s20 = scalar_lea.sflag [#allocation14], %s3820_s17  ;;  %s3505_s27 = scalar_lea.vmem %s4148_s13, 16 }
 0x8f9   : > { %p3506_p13 = scmp.ne.s32.totalorder %s4148_s13, %s3505_s27  ;;  %s3590_s16 = smov [#allocation13]  }
 0x8fa   : > { %s3509_s9 = sshll.u32 %s3590_s16, 4  ;;  %s3510_s9 = int_to_ptr.vmem [resolvable:$false] %s3509_s9 }
 0x8fb   : > { %p3507_p7 = pnand %p3506_p13, %p4228_p8  ;;  %s3511_s15 = scalar_lea.vmem %s3510_s9, 32 }
 0x8fc   : > { %p3512_p2 = scmp.lt.s32.totalorder %s4148_s13, %s3510_s9  ;;  %p3513_p6 = scmp.lt.s32.totalorder %s3511_s15, %s3505_s27 }
 0x8fd   : > { %p3508_p12 = pneg %p3507_p7 }
 0x8fe   : > { %p3514_p0 = por %p3513_p6, %p3512_p2 }
 0x900   : > { %p3515_p3 = pnand %p3514_p0, %p3508_p12 }
 0x902   : > { %3518 = shalt.err (!%p3515_p3)
}
 0x903   : > { %s3519_s17 = scalar_lea.hbm %s4146_s30, 16  ;;  %s3523_s19 = scalar_lea.hbm %s4197_s6, 32 }
 0x904   : > { %p3520_p1 = scmp.ne.s32.totalorder %s4146_s30, %s3519_s17  ;;  %p3524_p9 = scmp.lt.u32.totalorder %s4146_s30, %s4197_s6 }
 0x905   : > { %p3525_p4 = scmp.lt.u32.totalorder %s3523_s19, %s3519_s17  ;;  %p3527_p13 = scmp.lt.u32.totalorder %s3519_s17, %s4146_s30 }
 0x906   : > { %p3521_p5 = pnand %p3520_p1, %p4228_p8 }
 0x907   : > { %p3526_p10 = por %p3525_p4, %p3524_p9 }
 0x908   : > { %p3522_p11 = pneg %p3521_p5 }
 0x909   : > { %p3528_p7 = por %p3527_p13, %p3526_p10 }
 0x90b   : > { %p3529_p12 = pnand %p3528_p7, %p3522_p11 }
 0x90d   : > { %3532 = shalt.err (!%p3529_p12)
}
 0x90e   : > { %3246 = dma.vmem_to_hbm [thread:$0]  (%p4228_p8), %s4148_s13, 16, %s4146_s30, %s2597_s20  }
 0x90f PF: > { %s2634_s10 = sand.u32 1, %s3567_s21   ;;  %p4229_p2 = scmp.ne.s32.totalorder %s4210_s14, 0 }
 0x910   : > { %p4230_p6 = scmp.ge.s32.totalorder %s3579_s24, 2  ;;  %s2635_s29 = scalar_lea.sflag [#allocation8], %s2634_s10 }
 0x912   : > { %p3261_p0 = pnand %p4230_p6, %p4229_p2 }
 0x914   : > { %3558 = dma.done.wait (!%p3261_p0), %s2635_s29, 128  }
 0x915   : > { %3560 = vsyncadd (!%p3261_p0), %s2635_s29, 4294967168  ;;  %s2644_s8 = scalar_lea.sflag [#allocation14], %s2634_s10 }
 0x916   : > { %3562 = dma.done.wait (!%p3261_p0), %s2644_s8, 16  }
 0x917   : > { %3564 = vsyncadd (!%p3261_p0), %s2644_s8, 4294967280  ;;  %p24_p8 = scmp.ge.s32.totalorder %s3647_s25, 4   ;;  %s4231_s21 = smov %s3571_s22 }
 0x918   : > { %s4232_s22 = smov %s3575_s23  ;;  %s4233_s23 = smov %s3658_s28 }
 0x919   : > { %s4234_s24 = smov %s3647_s25  ;;  %26 = sbr.rel (!%p24_p8) target bundleno = 11 (0xb), region = 164 }
 0x920   :  { %2648 = vsyncpa [#allocation7], 1 }
 0x921   :  { %2650 = vsyncpa [#allocation7 + $0x1], 1 }
 0x922   :  { %2651 = vsyncpa [#allocation10], 1 }
 0x923   :  { %2653 = vsyncpa [#allocation10 + $0x1], 1 }
 0x924   :  { %2654 = vsyncpa [#allocation8], 1 }
 0x925   :  { %2656 = vsyncpa [#allocation8 + $0x1], 1 }
 0x926   :  { %2657 = vsyncpa [#allocation14], 1 }
 0x927   :  { %2659 = vsyncpa [#allocation14 + $0x1], 1 }

</bundles_post_ra>
